<compile_context>
chip_gen: v6e
topology: v6e:2x2x1
jax: 0.10.0
libtpu: 0.0.40
codegen_flags: <defaults>
</compile_context>

<pallas_src>
import functools
import numpy as np
import jax
import jax.numpy as jnp
from jax.experimental import pallas as pl
from jax.experimental.pallas import tpu as pltpu

ORIGINAL_REVERT_PROB = 0.33
TARGET_AUGMENTATION_RATIO = 0.2
ZERO_REPLACE_PROB = 0.66

# Round the max-crosses-per-block slot count up to this bucket so the kernel
# does not recompile every time the random plan changes slightly.
_CROSS_SLOT_BUCKET = 8


def _vmem_budget_bytes():
    try:
        cap = int(pltpu.get_tpu_info().vmem_capacity_bytes)
    except Exception:
        cap = 64 << 20          # conservative default (v7x per-TC VMEM)
    return cap * 3 // 4


def _choose_segments_per_block(n_seg, C, L, itemsize, batch, vmem_budget,
                               target_block_bytes=1 << 20):
    """Segments per grid block.

    Big enough to approach the HBM roofline (~1 MiB per per-array block),
    small enough that double-buffered 2-in + 2-out blocks fit the VMEM budget,
    and small enough that batch * n_groups >= 4 so both v7x TensorCores get
    work.  Multiple of 8 sublanes (16 for 16-bit dtypes).
    """
    sub = max(8, 32 // itemsize)                      # 8 for f32, 16 for bf16
    bytes_per_seg = C * L * itemsize
    g_vmem = max(sub, vmem_budget // (12 * bytes_per_seg))
    g = min(n_seg, max(1, target_block_bytes // bytes_per_seg), g_vmem)
    g = max(sub, (g // sub) * sub)
    while batch * int(np.ceil(n_seg / g)) < 4 and g > sub:
        g = max(sub, ((g // 2) // sub) * sub)
    return int(g)


def _build_cross_tables(mode_np, other_np, G, n_grp, bucket=_CROSS_SLOT_BUCKET):
    """Per-(batch, block) compacted cross-substitution tables (host side)."""
    B = mode_np.shape[0]
    m3 = mode_np.reshape(B, n_grp, G)
    o3 = other_np.reshape(B, n_grp, G)
    cross = (m3 == 3)
    counts = cross.sum(-1).astype(np.int32)                       # (B, n_grp)
    max_c = int(counts.max()) if counts.size else 0
    S = 0 if max_c == 0 else min(G, int(np.ceil(max_c / bucket)) * bucket)
    S_alloc = max(S, 1)
    pos = np.zeros((B, n_grp, S_alloc), np.int32)
    oth = np.zeros((B, n_grp, S_alloc), np.int32)
    for b in range(B):
        for g in range(n_grp):
            idx = np.nonzero(cross[b, g])[0]
            pos[b, g, :len(idx)] = idx
            oth[b, g, :len(idx)] = o3[b, g, idx]
    return counts, pos.reshape(B, -1), oth.reshape(B, -1), S


# ----------------------------- Pallas kernel --------------------------------
def _loc_aug_kernel(count_ref, pos_ref, other_ref,                 # SMEM (scalar prefetch)
                    mode_v_ref, wm_ref, orig_ref, orig_hbm,        # inputs
                    wm_out, uo_out,                                # outputs
                    cross_buf, cross_sem,                          # scratch
                    *, segs_per_block, max_cross):
    b = pl.program_id(0)
    grp = pl.program_id(1)
    seg0 = grp * segs_per_block

    # ---- hoist all scalar reads (before any DMA wait) and start cross DMAs --
    if max_cross:
        count = count_ref[b, grp]
        base = grp * max_cross
        pos = [pos_ref[b, base + s] for s in range(max_cross)]
        oth = [other_ref[b, base + s] for s in range(max_cross)]

        for s in range(max_cross):
            @pl.when(s < count)
            def _start(s=s):
                # Pull the "other" batch row for this segment from raw HBM into
                # its own scratch slot; latency hidden under the dense pass.
                pltpu.make_async_copy(
                    orig_hbm.at[oth[s], :, pl.ds(seg0 + pos[s], 1), :],
                    cross_buf.at[s], cross_sem.at[s]).start()

    # ---- dense vectorized pass over the whole (1, C, G, L) block ------------
    m4 = mode_v_ref[...][:, None, :, :]         # (1, 1, G, 1) int32
    wm = wm_ref[...]                            # (1, C, G, L)
    orig = orig_ref[...]                        # (1, C, G, L)

    # watermarked: revert -> orig, zero -> 0, else unchanged (mode 3 fixed below)
    wm_out[...] = jnp.where(m4 == 1, orig, jnp.where(m4 == 2, 0.0, wm))
    # update_original: zero -> 0, else original (mode 3 fixed below)
    uo_out[...] = jnp.where(m4 == 2, 0.0, orig)

    # ---- finish cross substitution (rare, ~7% of segments) ------------------
    if max_cross:
        for s in range(max_cross):
            @pl.when(s < count)
            def _scatter(s=s):
                # wait: shapes/sem must match the started copy (index is irrelevant)
                pltpu.make_async_copy(
                    orig_hbm.at[0, :, pl.ds(0, 1), :],
                    cross_buf.at[s], cross_sem.at[s]).wait()
                val = cross_buf[s]                               # (C, 1, L)
                wm_out[0, :, pl.ds(pos[s], 1), :] = val
                uo_out[0, :, pl.ds(pos[s], 1), :] = val


# ------------------------------- wrapper -------------------------------------
def localization_augment_pallas(original, watermarked, mode, other_idx,
                                segment_length, *, compute_dtype=None):
    """original/watermarked: [B, C, N] float. mode/other_idx: [B, n_seg] int."""
    B, C, N = original.shape
    L = int(segment_length)
    if compute_dtype is None:
        # Bandwidth-bound kernel: keep the input precision.  The torch module
        # upcasts to float32; pass compute_dtype=jnp.float32 to force that.
        compute_dtype = (original.dtype
                         if jnp.issubdtype(original.dtype, jnp.floating)
                         else jnp.float32)
    dtype = jnp.dtype(compute_dtype)
    itemsize = dtype.itemsize
    original = original.astype(dtype)
    watermarked = watermarked.astype(dtype)

    # Host-side plan tables (the module's plan is host-side numpy RNG anyway).
    mode_np = np.asarray(mode, dtype=np.int32)
    other_np = np.asarray(other_idx, dtype=np.int32)
    n_seg = int(np.ceil(N / L))
    assert mode_np.shape == (B, n_seg) and other_np.shape == (B, n_seg)

    vmem_budget = _vmem_budget_bytes()
    G = _choose_segments_per_block(n_seg, C, L, itemsize, B, vmem_budget)
    n_seg_pad = int(np.ceil(n_seg / G)) * G
    n_grp = n_seg_pad // G
    N_pad = n_seg_pad * L

    if n_seg_pad != n_seg:                       # ragged tail / group padding
        pad_cols = n_seg_pad - n_seg
        mode_np = np.pad(mode_np, ((0, 0), (0, pad_cols)))      # mode 0 = unchanged
        other_np = np.pad(other_np, ((0, 0), (0, pad_cols)))
    if N_pad != N:
        pad = ((0, 0), (0, 0), (0, N_pad - N))
        original = jnp.pad(original, pad)
        watermarked = jnp.pad(watermarked, pad)

    counts_np, pos_np, oth_np, S = _build_cross_tables(mode_np, other_np, G, n_grp)
    S_alloc = max(S, 1)

    # Free reshapes (split of the trailing dim only).
    orig_r = original.reshape(B, C, n_seg_pad, L)
    wm_r = watermarked.reshape(B, C, n_seg_pad, L)
    mode_v = jnp.asarray(mode_np.reshape(B, n_seg_pad, 1), dtype=jnp.int32)

    blk = (1, C, G, L)
    data_spec = pl.BlockSpec(blk, lambda b, g, cc, cp, co: (b, 0, g, 0))
    mode_spec = pl.BlockSpec((1, G, 1), lambda b, g, cc, cp, co: (b, g, 0))
    hbm_spec = pl.BlockSpec(memory_space=pl.ANY)     # raw HBM ref, manual DMA only

    grid_spec = pltpu.PrefetchScalarGridSpec(
        num_scalar_prefetch=3,
        grid=(B, n_grp),
        in_specs=[mode_spec, data_spec, data_spec, hbm_spec],
        out_specs=[data_spec, data_spec],
        scratch_shapes=[pltpu.VMEM((S_alloc, C, 1, L), dtype),
                        pltpu.SemaphoreType.DMA((S_alloc,))],
    )
    out_shape = (
        jax.ShapeDtypeStruct((B, C, n_seg_pad, L), dtype),   # augmented watermarked
        jax.ShapeDtypeStruct((B, C, n_seg_pad, L), dtype),   # update_original
    )

    blk_bytes = C * G * L * itemsize
    needed_vmem = 8 * blk_bytes + 4 * G * 4 + S_alloc * C * L * itemsize + (2 << 20)
    vmem_limit = int(min(vmem_budget, max(needed_vmem, 32 << 20)))

    fn = pl.pallas_call(
        functools.partial(_loc_aug_kernel, segs_per_block=G, max_cross=S),
        grid_spec=grid_spec,
        out_shape=out_shape,
        compiler_params=pltpu.CompilerParams(
            dimension_semantics=("parallel", "parallel"),
            vmem_limit_bytes=vmem_limit),
        cost_estimate=pl.CostEstimate(
            flops=0, transcendentals=0,
            bytes_accessed=int(4 * B * C * N_pad * itemsize)),
    )
    wm_o, uo_o = fn(jnp.asarray(counts_np), jnp.asarray(pos_np), jnp.asarray(oth_np),
                    mode_v, wm_r, orig_r, orig_r)
    wm_o = wm_o.reshape(B, C, N_pad)[:, :, :N]
    uo_o = uo_o.reshape(B, C, N_pad)[:, :, :N]

    # ground_truth is a pure function of the plan (1 only where unchanged);
    # broadcast lazily here instead of writing a full-res stream in the kernel.
    gt_seg = jnp.asarray(mode_np == 0, dtype=dtype)                # (B, n_seg_pad)
    gt = jnp.broadcast_to(gt_seg[:, None, :, None],
                          (B, C, n_seg_pad, L)).reshape(B, C, N_pad)[:, :, :N]

    # TODO(synk): with input_output_aliases (donated inputs) and a compacted
    # modified-segment grid, the ~80% unchanged wm/uo traffic could be skipped
    # entirely; kept full writes so callers may still read their inputs.
    # TODO(synk): for large channel counts, pre-transpose `original` to
    # (B, n_seg, C, L) for the HBM-ANY operand so each cross DMA is one
    # contiguous descriptor instead of C strided rows.
    return wm_o, gt, uo_o


# ------------------------ host-side augmentation plan -----------------------
def make_plan(batch_size, num_samples, segment_length, seed=0):
    """Reproduces the module's host-side random segment selection."""
    rng = np.random.RandomState(seed)
    n_seg = int(np.ceil(num_samples / segment_length))
    segs_to_modify = int(n_seg * TARGET_AUGMENTATION_RATIO)
    mode = np.zeros((batch_size, n_seg), dtype=np.int32)
    other = np.tile(np.arange(batch_size, dtype=np.int32)[:, None], (1, n_seg))
    stats = {'original_revert': 0, 'zero_replace': 0,
             'cross_substitute': 0, 'unchanged': 0}
    for b in range(batch_size):
        chosen = rng.choice(np.arange(n_seg), segs_to_modify, replace=False)
        for seg in chosen:
            start = seg * segment_length
            end = min(start + segment_length, num_samples)
            p = rng.rand()
            if p < ORIGINAL_REVERT_PROB:
                mode[b, seg] = 1
                stats['original_revert'] += end - start
            elif p < ZERO_REPLACE_PROB:
                mode[b, seg] = 2
                stats['zero_replace'] += end - start
            elif batch_size >= 2:
                mode[b, seg] = 3
                others = [j for j in range(batch_size) if j != b]
                other[b, seg] = rng.choice(others)
                stats['cross_substitute'] += end - start
    total_samples = batch_size * num_samples
    modified = (stats['original_revert'] + stats['zero_replace']
                + stats['cross_substitute'])
    stats['unchanged'] = total_samples - modified
    stats = {k: float(v / total_samples * 100.0) for k, v in stats.items()}
    return mode, other, stats


# ------------------------------ numpy reference ------------------------------
def reference_numpy(original, watermarked, mode, other, segment_length):
    original = np.asarray(original, dtype=np.float32)
    wm = np.asarray(watermarked, dtype=np.float32).copy()
    uo = original.copy()
    gt = np.ones_like(wm)
    B, C, N = wm.shape
    n_seg = N // segment_length
    for b in range(B):
        for s in range(n_seg):
            a, e = s * segment_length, (s + 1) * segment_length
            m = mode[b, s]
            if m == 1:
                wm[b, :, a:e] = original[b, :, a:e]
                gt[b, :, a:e] = 0
            elif m == 2:
                wm[b, :, a:e] = 0
                uo[b, :, a:e] = 0
                gt[b, :, a:e] = 0
            elif m == 3:
                o = other[b, s]
                wm[b, :, a:e] = original[o, :, a:e]
                uo[b, :, a:e] = original[o, :, a:e]
                gt[b, :, a:e] = 0
    return wm, gt, uo


# ------------------------------------ main -----------------------------------
if __name__ == "__main__":
    sample_rate = 1600
    window_duration = 0.08
    segment_length = int(sample_rate * window_duration)   # 128 samples/segment
    B, C, N = 2, 2, 16 * segment_length                   # [2, 2, 2048]

    key = jax.random.PRNGKey(0)
    k1, k2 = jax.random.split(key)
    original = jax.random.normal(k1, (B, C, N), dtype=jnp.float32)
    watermark_residual = 0.01 * jax.random.normal(k2, (B, C, N), dtype=jnp.float32)
    watermarked = original + watermark_residual

    mode_np, other_np, stats = make_plan(B, N, segment_length, seed=0)

    # Smoke-test coverage: make sure every augmentation branch (revert, zero,
    # cross-substitute from both rows) is exercised at this tiny size.
    mode_np[0, 0], mode_np[0, 1], mode_np[0, 2] = 1, 2, 3
    other_np[0, 2] = 1
    mode_np[1, 5] = 3
    other_np[1, 5] = 0
    assert other_np.min() >= 0 and other_np.max() < B

    wm_out, gt_out, uo_out = localization_augment_pallas(
        original, watermarked, jnp.asarray(mode_np), jnp.asarray(other_np),
        segment_length)
    jax.block_until_ready((wm_out, gt_out, uo_out))

    # correctness check vs. numpy reference
    wm_ref, gt_ref, uo_ref = reference_numpy(
        np.asarray(original), np.asarray(watermarked), mode_np, other_np,
        segment_length)
    assert np.allclose(np.asarray(wm_out), wm_ref, atol=1e-6)
    assert np.allclose(np.asarray(gt_out), gt_ref, atol=1e-6)
    assert np.allclose(np.asarray(uo_out), uo_ref, atol=1e-6)

    # TODO(synk): the AudioSignal wrapper and logging/stats dict are plain
    # Python metadata (stats computed in make_plan), not kernel work.
    print("KERNEL_OK")
</pallas_src>

<mosaic_0001>
module attributes {stable_mosaic.version = 11 : i64} {
  func.func @_loc_aug_kernel(%arg0: i32, %arg1: i32, %arg2: memref<2x2xi32, #tpu.memory_space<smem>>, %arg3: memref<2x16xi32, #tpu.memory_space<smem>>, %arg4: memref<2x16xi32, #tpu.memory_space<smem>>, %arg5: memref<1x8x1xi32, #tpu.memory_space<vmem>>, %arg6: memref<1x2x8x128xf32, #tpu.memory_space<vmem>>, %arg7: memref<1x2x8x128xf32, #tpu.memory_space<vmem>>, %arg8: memref<2x2x16x128xf32, #tpu.memory_space<any>>, %arg9: memref<1x2x8x128xf32, #tpu.memory_space<vmem>>, %arg10: memref<1x2x8x128xf32, #tpu.memory_space<vmem>>, %arg11: memref<8x2x1x128xf32, #tpu.memory_space<vmem>>, %arg12: memref<8x!tpu.dma_semaphore, #tpu.memory_space<semaphore_mem>>) attributes {dimension_semantics = [#tpu.dimension_semantics<parallel>, #tpu.dimension_semantics<parallel>], iteration_bounds = array<i64: 2, 2>, scalar_prefetch = 3 : i64, scratch_operands = 2 : i64, tpu.core_type = #tpu.core_type<tc>, window_params = [{transform_indices = @transform_0, window_bounds = array<i64: 1, 8, 1>}, {transform_indices = @transform_1, window_bounds = array<i64: 1, 2, 8, 128>}, {transform_indices = @transform_2, window_bounds = array<i64: 1, 2, 8, 128>}, {}, {transform_indices = @transform_4, window_bounds = array<i64: 1, 2, 8, 128>}, {transform_indices = @transform_5, window_bounds = array<i64: 1, 2, 8, 128>}]} {
    %c8_i32 = arith.constant 8 : i32
    %0 = arith.muli %arg1, %c8_i32 : i32
    %1 = arith.index_cast %arg0 : i32 to index
    %2 = arith.index_cast %arg1 : i32 to index
    %3 = memref.load %arg2[%1, %2] : memref<2x2xi32, #tpu.memory_space<smem>>
    %c8_i32_0 = arith.constant 8 : i32
    %4 = arith.muli %arg1, %c8_i32_0 : i32
    %c0_i32 = arith.constant 0 : i32
    %5 = arith.addi %4, %c0_i32 : i32
    %6 = arith.index_cast %arg0 : i32 to index
    %7 = arith.index_cast %5 : i32 to index
    %8 = memref.load %arg3[%6, %7] : memref<2x16xi32, #tpu.memory_space<smem>>
    %c1_i32 = arith.constant 1 : i32
    %9 = arith.addi %4, %c1_i32 : i32
    %10 = arith.index_cast %arg0 : i32 to index
    %11 = arith.index_cast %9 : i32 to index
    %12 = memref.load %arg3[%10, %11] : memref<2x16xi32, #tpu.memory_space<smem>>
    %c2_i32 = arith.constant 2 : i32
    %13 = arith.addi %4, %c2_i32 : i32
    %14 = arith.index_cast %arg0 : i32 to index
    %15 = arith.index_cast %13 : i32 to index
    %16 = memref.load %arg3[%14, %15] : memref<2x16xi32, #tpu.memory_space<smem>>
    %c3_i32 = arith.constant 3 : i32
    %17 = arith.addi %4, %c3_i32 : i32
    %18 = arith.index_cast %arg0 : i32 to index
    %19 = arith.index_cast %17 : i32 to index
    %20 = memref.load %arg3[%18, %19] : memref<2x16xi32, #tpu.memory_space<smem>>
    %c4_i32 = arith.constant 4 : i32
    %21 = arith.addi %4, %c4_i32 : i32
    %22 = arith.index_cast %arg0 : i32 to index
    %23 = arith.index_cast %21 : i32 to index
    %24 = memref.load %arg3[%22, %23] : memref<2x16xi32, #tpu.memory_space<smem>>
    %c5_i32 = arith.constant 5 : i32
    %25 = arith.addi %4, %c5_i32 : i32
    %26 = arith.index_cast %arg0 : i32 to index
    %27 = arith.index_cast %25 : i32 to index
    %28 = memref.load %arg3[%26, %27] : memref<2x16xi32, #tpu.memory_space<smem>>
    %c6_i32 = arith.constant 6 : i32
    %29 = arith.addi %4, %c6_i32 : i32
    %30 = arith.index_cast %arg0 : i32 to index
    %31 = arith.index_cast %29 : i32 to index
    %32 = memref.load %arg3[%30, %31] : memref<2x16xi32, #tpu.memory_space<smem>>
    %c7_i32 = arith.constant 7 : i32
    %33 = arith.addi %4, %c7_i32 : i32
    %34 = arith.index_cast %arg0 : i32 to index
    %35 = arith.index_cast %33 : i32 to index
    %36 = memref.load %arg3[%34, %35] : memref<2x16xi32, #tpu.memory_space<smem>>
    %c0_i32_1 = arith.constant 0 : i32
    %37 = arith.addi %4, %c0_i32_1 : i32
    %38 = arith.index_cast %arg0 : i32 to index
    %39 = arith.index_cast %37 : i32 to index
    %40 = memref.load %arg4[%38, %39] : memref<2x16xi32, #tpu.memory_space<smem>>
    %c1_i32_2 = arith.constant 1 : i32
    %41 = arith.addi %4, %c1_i32_2 : i32
    %42 = arith.index_cast %arg0 : i32 to index
    %43 = arith.index_cast %41 : i32 to index
    %44 = memref.load %arg4[%42, %43] : memref<2x16xi32, #tpu.memory_space<smem>>
    %c2_i32_3 = arith.constant 2 : i32
    %45 = arith.addi %4, %c2_i32_3 : i32
    %46 = arith.index_cast %arg0 : i32 to index
    %47 = arith.index_cast %45 : i32 to index
    %48 = memref.load %arg4[%46, %47] : memref<2x16xi32, #tpu.memory_space<smem>>
    %c3_i32_4 = arith.constant 3 : i32
    %49 = arith.addi %4, %c3_i32_4 : i32
    %50 = arith.index_cast %arg0 : i32 to index
    %51 = arith.index_cast %49 : i32 to index
    %52 = memref.load %arg4[%50, %51] : memref<2x16xi32, #tpu.memory_space<smem>>
    %c4_i32_5 = arith.constant 4 : i32
    %53 = arith.addi %4, %c4_i32_5 : i32
    %54 = arith.index_cast %arg0 : i32 to index
    %55 = arith.index_cast %53 : i32 to index
    %56 = memref.load %arg4[%54, %55] : memref<2x16xi32, #tpu.memory_space<smem>>
    %c5_i32_6 = arith.constant 5 : i32
    %57 = arith.addi %4, %c5_i32_6 : i32
    %58 = arith.index_cast %arg0 : i32 to index
    %59 = arith.index_cast %57 : i32 to index
    %60 = memref.load %arg4[%58, %59] : memref<2x16xi32, #tpu.memory_space<smem>>
    %c6_i32_7 = arith.constant 6 : i32
    %61 = arith.addi %4, %c6_i32_7 : i32
    %62 = arith.index_cast %arg0 : i32 to index
    %63 = arith.index_cast %61 : i32 to index
    %64 = memref.load %arg4[%62, %63] : memref<2x16xi32, #tpu.memory_space<smem>>
    %c7_i32_8 = arith.constant 7 : i32
    %65 = arith.addi %4, %c7_i32_8 : i32
    %66 = arith.index_cast %arg0 : i32 to index
    %67 = arith.index_cast %65 : i32 to index
    %68 = memref.load %arg4[%66, %67] : memref<2x16xi32, #tpu.memory_space<smem>>
    %c0_i32_9 = arith.constant 0 : i32
    %69 = arith.cmpi sgt, %3, %c0_i32_9 : i32
    %70 = arith.extui %69 : i1 to i32
    %c0_i32_10 = arith.constant 0 : i32
    %71 = arith.cmpi ne, %70, %c0_i32_10 : i32
    scf.if %71 {
      %140 = arith.addi %0, %8 : i32
      %c0_i32_63 = arith.constant 0 : i32
      %c0_i32_64 = arith.constant 0 : i32
      %c0_i32_65 = arith.constant 0 : i32
      %c0_i32_66 = arith.constant 0 : i32
      %141 = tpu.memref_slice %arg8[%40, %c0_i32_65, %140, %c0_i32_66] : memref<2x2x16x128xf32, #tpu.memory_space<any>> -> memref<1x2x1x128xf32, #tpu.memory_space<any>>
      %142 = tpu.memref_squeeze %141 : memref<1x2x1x128xf32, #tpu.memory_space<any>> -> memref<2x1x128xf32, #tpu.memory_space<any>>
      %c0_i32_67 = arith.constant 0 : i32
      %c0_i32_68 = arith.constant 0 : i32
      %c0_i32_69 = arith.constant 0 : i32
      %143 = tpu.memref_slice %arg11[%c0_i32_63, %c0_i32_67, %c0_i32_68, %c0_i32_69] : memref<8x2x1x128xf32, #tpu.memory_space<vmem>> -> memref<1x2x1x128xf32, #tpu.memory_space<vmem>>
      %144 = tpu.memref_squeeze %143 : memref<1x2x1x128xf32, #tpu.memory_space<vmem>> -> memref<2x1x128xf32, #tpu.memory_space<vmem>>
      %145 = tpu.memref_slice %arg12[%c0_i32_64] : memref<8x!tpu.dma_semaphore, #tpu.memory_space<semaphore_mem>> -> memref<1x!tpu.dma_semaphore, #tpu.memory_space<semaphore_mem>>
      %146 = tpu.memref_squeeze %145 : memref<1x!tpu.dma_semaphore, #tpu.memory_space<semaphore_mem>> -> memref<!tpu.dma_semaphore, #tpu.memory_space<semaphore_mem>>
      tpu.enqueue_dma source(%142 : memref<2x1x128xf32, #tpu.memory_space<any>>) target(%144 : memref<2x1x128xf32, #tpu.memory_space<vmem>>) target_semaphore(%146 : memref<!tpu.dma_semaphore, #tpu.memory_space<semaphore_mem>>)
    } else {
    }
    %c1_i32_11 = arith.constant 1 : i32
    %72 = arith.cmpi sgt, %3, %c1_i32_11 : i32
    %73 = arith.extui %72 : i1 to i32
    %c0_i32_12 = arith.constant 0 : i32
    %74 = arith.cmpi ne, %73, %c0_i32_12 : i32
    scf.if %74 {
      %140 = arith.addi %0, %12 : i32
      %c1_i32_63 = arith.constant 1 : i32
      %c1_i32_64 = arith.constant 1 : i32
      %c0_i32_65 = arith.constant 0 : i32
      %c0_i32_66 = arith.constant 0 : i32
      %141 = tpu.memref_slice %arg8[%44, %c0_i32_65, %140, %c0_i32_66] : memref<2x2x16x128xf32, #tpu.memory_space<any>> -> memref<1x2x1x128xf32, #tpu.memory_space<any>>
      %142 = tpu.memref_squeeze %141 : memref<1x2x1x128xf32, #tpu.memory_space<any>> -> memref<2x1x128xf32, #tpu.memory_space<any>>
      %c0_i32_67 = arith.constant 0 : i32
      %c0_i32_68 = arith.constant 0 : i32
      %c0_i32_69 = arith.constant 0 : i32
      %143 = tpu.memref_slice %arg11[%c1_i32_63, %c0_i32_67, %c0_i32_68, %c0_i32_69] : memref<8x2x1x128xf32, #tpu.memory_space<vmem>> -> memref<1x2x1x128xf32, #tpu.memory_space<vmem>>
      %144 = tpu.memref_squeeze %143 : memref<1x2x1x128xf32, #tpu.memory_space<vmem>> -> memref<2x1x128xf32, #tpu.memory_space<vmem>>
      %145 = tpu.memref_slice %arg12[%c1_i32_64] : memref<8x!tpu.dma_semaphore, #tpu.memory_space<semaphore_mem>> -> memref<1x!tpu.dma_semaphore, #tpu.memory_space<semaphore_mem>>
      %146 = tpu.memref_squeeze %145 : memref<1x!tpu.dma_semaphore, #tpu.memory_space<semaphore_mem>> -> memref<!tpu.dma_semaphore, #tpu.memory_space<semaphore_mem>>
      tpu.enqueue_dma source(%142 : memref<2x1x128xf32, #tpu.memory_space<any>>) target(%144 : memref<2x1x128xf32, #tpu.memory_space<vmem>>) target_semaphore(%146 : memref<!tpu.dma_semaphore, #tpu.memory_space<semaphore_mem>>)
    } else {
    }
    %c2_i32_13 = arith.constant 2 : i32
    %75 = arith.cmpi sgt, %3, %c2_i32_13 : i32
    %76 = arith.extui %75 : i1 to i32
    %c0_i32_14 = arith.constant 0 : i32
    %77 = arith.cmpi ne, %76, %c0_i32_14 : i32
    scf.if %77 {
      %140 = arith.addi %0, %16 : i32
      %c2_i32_63 = arith.constant 2 : i32
      %c2_i32_64 = arith.constant 2 : i32
      %c0_i32_65 = arith.constant 0 : i32
      %c0_i32_66 = arith.constant 0 : i32
      %141 = tpu.memref_slice %arg8[%48, %c0_i32_65, %140, %c0_i32_66] : memref<2x2x16x128xf32, #tpu.memory_space<any>> -> memref<1x2x1x128xf32, #tpu.memory_space<any>>
      %142 = tpu.memref_squeeze %141 : memref<1x2x1x128xf32, #tpu.memory_space<any>> -> memref<2x1x128xf32, #tpu.memory_space<any>>
      %c0_i32_67 = arith.constant 0 : i32
      %c0_i32_68 = arith.constant 0 : i32
      %c0_i32_69 = arith.constant 0 : i32
      %143 = tpu.memref_slice %arg11[%c2_i32_63, %c0_i32_67, %c0_i32_68, %c0_i32_69] : memref<8x2x1x128xf32, #tpu.memory_space<vmem>> -> memref<1x2x1x128xf32, #tpu.memory_space<vmem>>
      %144 = tpu.memref_squeeze %143 : memref<1x2x1x128xf32, #tpu.memory_space<vmem>> -> memref<2x1x128xf32, #tpu.memory_space<vmem>>
      %145 = tpu.memref_slice %arg12[%c2_i32_64] : memref<8x!tpu.dma_semaphore, #tpu.memory_space<semaphore_mem>> -> memref<1x!tpu.dma_semaphore, #tpu.memory_space<semaphore_mem>>
      %146 = tpu.memref_squeeze %145 : memref<1x!tpu.dma_semaphore, #tpu.memory_space<semaphore_mem>> -> memref<!tpu.dma_semaphore, #tpu.memory_space<semaphore_mem>>
      tpu.enqueue_dma source(%142 : memref<2x1x128xf32, #tpu.memory_space<any>>) target(%144 : memref<2x1x128xf32, #tpu.memory_space<vmem>>) target_semaphore(%146 : memref<!tpu.dma_semaphore, #tpu.memory_space<semaphore_mem>>)
    } else {
    }
    %c3_i32_15 = arith.constant 3 : i32
    %78 = arith.cmpi sgt, %3, %c3_i32_15 : i32
    %79 = arith.extui %78 : i1 to i32
    %c0_i32_16 = arith.constant 0 : i32
    %80 = arith.cmpi ne, %79, %c0_i32_16 : i32
    scf.if %80 {
      %140 = arith.addi %0, %20 : i32
      %c3_i32_63 = arith.constant 3 : i32
      %c3_i32_64 = arith.constant 3 : i32
      %c0_i32_65 = arith.constant 0 : i32
      %c0_i32_66 = arith.constant 0 : i32
      %141 = tpu.memref_slice %arg8[%52, %c0_i32_65, %140, %c0_i32_66] : memref<2x2x16x128xf32, #tpu.memory_space<any>> -> memref<1x2x1x128xf32, #tpu.memory_space<any>>
      %142 = tpu.memref_squeeze %141 : memref<1x2x1x128xf32, #tpu.memory_space<any>> -> memref<2x1x128xf32, #tpu.memory_space<any>>
      %c0_i32_67 = arith.constant 0 : i32
      %c0_i32_68 = arith.constant 0 : i32
      %c0_i32_69 = arith.constant 0 : i32
      %143 = tpu.memref_slice %arg11[%c3_i32_63, %c0_i32_67, %c0_i32_68, %c0_i32_69] : memref<8x2x1x128xf32, #tpu.memory_space<vmem>> -> memref<1x2x1x128xf32, #tpu.memory_space<vmem>>
      %144 = tpu.memref_squeeze %143 : memref<1x2x1x128xf32, #tpu.memory_space<vmem>> -> memref<2x1x128xf32, #tpu.memory_space<vmem>>
      %145 = tpu.memref_slice %arg12[%c3_i32_64] : memref<8x!tpu.dma_semaphore, #tpu.memory_space<semaphore_mem>> -> memref<1x!tpu.dma_semaphore, #tpu.memory_space<semaphore_mem>>
      %146 = tpu.memref_squeeze %145 : memref<1x!tpu.dma_semaphore, #tpu.memory_space<semaphore_mem>> -> memref<!tpu.dma_semaphore, #tpu.memory_space<semaphore_mem>>
      tpu.enqueue_dma source(%142 : memref<2x1x128xf32, #tpu.memory_space<any>>) target(%144 : memref<2x1x128xf32, #tpu.memory_space<vmem>>) target_semaphore(%146 : memref<!tpu.dma_semaphore, #tpu.memory_space<semaphore_mem>>)
    } else {
    }
    %c4_i32_17 = arith.constant 4 : i32
    %81 = arith.cmpi sgt, %3, %c4_i32_17 : i32
    %82 = arith.extui %81 : i1 to i32
    %c0_i32_18 = arith.constant 0 : i32
    %83 = arith.cmpi ne, %82, %c0_i32_18 : i32
    scf.if %83 {
      %140 = arith.addi %0, %24 : i32
      %c4_i32_63 = arith.constant 4 : i32
      %c4_i32_64 = arith.constant 4 : i32
      %c0_i32_65 = arith.constant 0 : i32
      %c0_i32_66 = arith.constant 0 : i32
      %141 = tpu.memref_slice %arg8[%56, %c0_i32_65, %140, %c0_i32_66] : memref<2x2x16x128xf32, #tpu.memory_space<any>> -> memref<1x2x1x128xf32, #tpu.memory_space<any>>
      %142 = tpu.memref_squeeze %141 : memref<1x2x1x128xf32, #tpu.memory_space<any>> -> memref<2x1x128xf32, #tpu.memory_space<any>>
      %c0_i32_67 = arith.constant 0 : i32
      %c0_i32_68 = arith.constant 0 : i32
      %c0_i32_69 = arith.constant 0 : i32
      %143 = tpu.memref_slice %arg11[%c4_i32_63, %c0_i32_67, %c0_i32_68, %c0_i32_69] : memref<8x2x1x128xf32, #tpu.memory_space<vmem>> -> memref<1x2x1x128xf32, #tpu.memory_space<vmem>>
      %144 = tpu.memref_squeeze %143 : memref<1x2x1x128xf32, #tpu.memory_space<vmem>> -> memref<2x1x128xf32, #tpu.memory_space<vmem>>
      %145 = tpu.memref_slice %arg12[%c4_i32_64] : memref<8x!tpu.dma_semaphore, #tpu.memory_space<semaphore_mem>> -> memref<1x!tpu.dma_semaphore, #tpu.memory_space<semaphore_mem>>
      %146 = tpu.memref_squeeze %145 : memref<1x!tpu.dma_semaphore, #tpu.memory_space<semaphore_mem>> -> memref<!tpu.dma_semaphore, #tpu.memory_space<semaphore_mem>>
      tpu.enqueue_dma source(%142 : memref<2x1x128xf32, #tpu.memory_space<any>>) target(%144 : memref<2x1x128xf32, #tpu.memory_space<vmem>>) target_semaphore(%146 : memref<!tpu.dma_semaphore, #tpu.memory_space<semaphore_mem>>)
    } else {
    }
    %c5_i32_19 = arith.constant 5 : i32
    %84 = arith.cmpi sgt, %3, %c5_i32_19 : i32
    %85 = arith.extui %84 : i1 to i32
    %c0_i32_20 = arith.constant 0 : i32
    %86 = arith.cmpi ne, %85, %c0_i32_20 : i32
    scf.if %86 {
      %140 = arith.addi %0, %28 : i32
      %c5_i32_63 = arith.constant 5 : i32
      %c5_i32_64 = arith.constant 5 : i32
      %c0_i32_65 = arith.constant 0 : i32
      %c0_i32_66 = arith.constant 0 : i32
      %141 = tpu.memref_slice %arg8[%60, %c0_i32_65, %140, %c0_i32_66] : memref<2x2x16x128xf32, #tpu.memory_space<any>> -> memref<1x2x1x128xf32, #tpu.memory_space<any>>
      %142 = tpu.memref_squeeze %141 : memref<1x2x1x128xf32, #tpu.memory_space<any>> -> memref<2x1x128xf32, #tpu.memory_space<any>>
      %c0_i32_67 = arith.constant 0 : i32
      %c0_i32_68 = arith.constant 0 : i32
      %c0_i32_69 = arith.constant 0 : i32
      %143 = tpu.memref_slice %arg11[%c5_i32_63, %c0_i32_67, %c0_i32_68, %c0_i32_69] : memref<8x2x1x128xf32, #tpu.memory_space<vmem>> -> memref<1x2x1x128xf32, #tpu.memory_space<vmem>>
      %144 = tpu.memref_squeeze %143 : memref<1x2x1x128xf32, #tpu.memory_space<vmem>> -> memref<2x1x128xf32, #tpu.memory_space<vmem>>
      %145 = tpu.memref_slice %arg12[%c5_i32_64] : memref<8x!tpu.dma_semaphore, #tpu.memory_space<semaphore_mem>> -> memref<1x!tpu.dma_semaphore, #tpu.memory_space<semaphore_mem>>
      %146 = tpu.memref_squeeze %145 : memref<1x!tpu.dma_semaphore, #tpu.memory_space<semaphore_mem>> -> memref<!tpu.dma_semaphore, #tpu.memory_space<semaphore_mem>>
      tpu.enqueue_dma source(%142 : memref<2x1x128xf32, #tpu.memory_space<any>>) target(%144 : memref<2x1x128xf32, #tpu.memory_space<vmem>>) target_semaphore(%146 : memref<!tpu.dma_semaphore, #tpu.memory_space<semaphore_mem>>)
    } else {
    }
    %c6_i32_21 = arith.constant 6 : i32
    %87 = arith.cmpi sgt, %3, %c6_i32_21 : i32
    %88 = arith.extui %87 : i1 to i32
    %c0_i32_22 = arith.constant 0 : i32
    %89 = arith.cmpi ne, %88, %c0_i32_22 : i32
    scf.if %89 {
      %140 = arith.addi %0, %32 : i32
      %c6_i32_63 = arith.constant 6 : i32
      %c6_i32_64 = arith.constant 6 : i32
      %c0_i32_65 = arith.constant 0 : i32
      %c0_i32_66 = arith.constant 0 : i32
      %141 = tpu.memref_slice %arg8[%64, %c0_i32_65, %140, %c0_i32_66] : memref<2x2x16x128xf32, #tpu.memory_space<any>> -> memref<1x2x1x128xf32, #tpu.memory_space<any>>
      %142 = tpu.memref_squeeze %141 : memref<1x2x1x128xf32, #tpu.memory_space<any>> -> memref<2x1x128xf32, #tpu.memory_space<any>>
      %c0_i32_67 = arith.constant 0 : i32
      %c0_i32_68 = arith.constant 0 : i32
      %c0_i32_69 = arith.constant 0 : i32
      %143 = tpu.memref_slice %arg11[%c6_i32_63, %c0_i32_67, %c0_i32_68, %c0_i32_69] : memref<8x2x1x128xf32, #tpu.memory_space<vmem>> -> memref<1x2x1x128xf32, #tpu.memory_space<vmem>>
      %144 = tpu.memref_squeeze %143 : memref<1x2x1x128xf32, #tpu.memory_space<vmem>> -> memref<2x1x128xf32, #tpu.memory_space<vmem>>
      %145 = tpu.memref_slice %arg12[%c6_i32_64] : memref<8x!tpu.dma_semaphore, #tpu.memory_space<semaphore_mem>> -> memref<1x!tpu.dma_semaphore, #tpu.memory_space<semaphore_mem>>
      %146 = tpu.memref_squeeze %145 : memref<1x!tpu.dma_semaphore, #tpu.memory_space<semaphore_mem>> -> memref<!tpu.dma_semaphore, #tpu.memory_space<semaphore_mem>>
      tpu.enqueue_dma source(%142 : memref<2x1x128xf32, #tpu.memory_space<any>>) target(%144 : memref<2x1x128xf32, #tpu.memory_space<vmem>>) target_semaphore(%146 : memref<!tpu.dma_semaphore, #tpu.memory_space<semaphore_mem>>)
    } else {
    }
    %c7_i32_23 = arith.constant 7 : i32
    %90 = arith.cmpi sgt, %3, %c7_i32_23 : i32
    %91 = arith.extui %90 : i1 to i32
    %c0_i32_24 = arith.constant 0 : i32
    %92 = arith.cmpi ne, %91, %c0_i32_24 : i32
    scf.if %92 {
      %140 = arith.addi %0, %36 : i32
      %c7_i32_63 = arith.constant 7 : i32
      %c7_i32_64 = arith.constant 7 : i32
      %c0_i32_65 = arith.constant 0 : i32
      %c0_i32_66 = arith.constant 0 : i32
      %141 = tpu.memref_slice %arg8[%68, %c0_i32_65, %140, %c0_i32_66] : memref<2x2x16x128xf32, #tpu.memory_space<any>> -> memref<1x2x1x128xf32, #tpu.memory_space<any>>
      %142 = tpu.memref_squeeze %141 : memref<1x2x1x128xf32, #tpu.memory_space<any>> -> memref<2x1x128xf32, #tpu.memory_space<any>>
      %c0_i32_67 = arith.constant 0 : i32
      %c0_i32_68 = arith.constant 0 : i32
      %c0_i32_69 = arith.constant 0 : i32
      %143 = tpu.memref_slice %arg11[%c7_i32_63, %c0_i32_67, %c0_i32_68, %c0_i32_69] : memref<8x2x1x128xf32, #tpu.memory_space<vmem>> -> memref<1x2x1x128xf32, #tpu.memory_space<vmem>>
      %144 = tpu.memref_squeeze %143 : memref<1x2x1x128xf32, #tpu.memory_space<vmem>> -> memref<2x1x128xf32, #tpu.memory_space<vmem>>
      %145 = tpu.memref_slice %arg12[%c7_i32_64] : memref<8x!tpu.dma_semaphore, #tpu.memory_space<semaphore_mem>> -> memref<1x!tpu.dma_semaphore, #tpu.memory_space<semaphore_mem>>
      %146 = tpu.memref_squeeze %145 : memref<1x!tpu.dma_semaphore, #tpu.memory_space<semaphore_mem>> -> memref<!tpu.dma_semaphore, #tpu.memory_space<semaphore_mem>>
      tpu.enqueue_dma source(%142 : memref<2x1x128xf32, #tpu.memory_space<any>>) target(%144 : memref<2x1x128xf32, #tpu.memory_space<vmem>>) target_semaphore(%146 : memref<!tpu.dma_semaphore, #tpu.memory_space<semaphore_mem>>)
    } else {
    }
    %c0 = arith.constant 0 : index
    %c0_25 = arith.constant 0 : index
    %c0_26 = arith.constant 0 : index
    %93 = vector.load %arg5[%c0, %c0_25, %c0_26] : memref<1x8x1xi32, #tpu.memory_space<vmem>>, vector<1x8x1xi32>
    %94 = vector.shape_cast %93 : vector<1x8x1xi32> to vector<1x1x8x1xi32>
    %c0_27 = arith.constant 0 : index
    %c0_28 = arith.constant 0 : index
    %c0_29 = arith.constant 0 : index
    %c0_30 = arith.constant 0 : index
    %95 = vector.load %arg6[%c0_27, %c0_28, %c0_29, %c0_30] : memref<1x2x8x128xf32, #tpu.memory_space<vmem>>, vector<1x2x8x128xf32>
    %c0_31 = arith.constant 0 : index
    %c0_32 = arith.constant 0 : index
    %c0_33 = arith.constant 0 : index
    %c0_34 = arith.constant 0 : index
    %96 = vector.load %arg7[%c0_31, %c0_32, %c0_33, %c0_34] : memref<1x2x8x128xf32, #tpu.memory_space<vmem>>, vector<1x2x8x128xf32>
    %c1_i32_35 = arith.constant 1 : i32
    %97 = vector.broadcast %c1_i32_35 : i32 to vector<1x1x8x1xi32>
    %98 = arith.cmpi eq, %94, %97 : vector<1x1x8x1xi32>
    %c2_i32_36 = arith.constant 2 : i32
    %99 = vector.broadcast %c2_i32_36 : i32 to vector<1x1x8x1xi32>
    %100 = arith.cmpi eq, %94, %99 : vector<1x1x8x1xi32>
    %cst = arith.constant 0.000000e+00 : f32
    %101 = vector.shape_cast %100 : vector<1x1x8x1xi1> to vector<1x1x8x1xi1>
    %102 = vector.broadcast %101 : vector<1x1x8x1xi1> to vector<1x2x8x128xi1>
    %103 = vector.broadcast %cst : f32 to vector<1x2x8x128xf32>
    %104 = arith.select %102, %103, %95 : vector<1x2x8x128xi1>, vector<1x2x8x128xf32>
    %105 = vector.shape_cast %98 : vector<1x1x8x1xi1> to vector<1x1x8x1xi1>
    %106 = vector.broadcast %105 : vector<1x1x8x1xi1> to vector<1x2x8x128xi1>
    %107 = arith.select %106, %96, %104 : vector<1x2x8x128xi1>, vector<1x2x8x128xf32>
    %c0_37 = arith.constant 0 : index
    %c0_38 = arith.constant 0 : index
    %c0_39 = arith.constant 0 : index
    %c0_40 = arith.constant 0 : index
    %108 = vector.load %arg9[%c0_37, %c0_38, %c0_39, %c0_40] : memref<1x2x8x128xf32, #tpu.memory_space<vmem>>, vector<1x2x8x128xf32>
    tpu.vector_store %arg9[%c0_37, %c0_38, %c0_39, %c0_40], %107 {strides = array<i32>} : memref<1x2x8x128xf32, #tpu.memory_space<vmem>>, vector<1x2x8x128xf32>,
    %c2_i32_41 = arith.constant 2 : i32
    %109 = vector.broadcast %c2_i32_41 : i32 to vector<1x1x8x1xi32>
    %110 = arith.cmpi eq, %94, %109 : vector<1x1x8x1xi32>
    %cst_42 = arith.constant 0.000000e+00 : f32
    %111 = vector.shape_cast %110 : vector<1x1x8x1xi1> to vector<1x1x8x1xi1>
    %112 = vector.broadcast %111 : vector<1x1x8x1xi1> to vector<1x2x8x128xi1>
    %113 = vector.broadcast %cst_42 : f32 to vector<1x2x8x128xf32>
    %114 = arith.select %112, %113, %96 : vector<1x2x8x128xi1>, vector<1x2x8x128xf32>
    %c0_43 = arith.constant 0 : index
    %c0_44 = arith.constant 0 : index
    %c0_45 = arith.constant 0 : index
    %c0_46 = arith.constant 0 : index
    %115 = vector.load %arg10[%c0_43, %c0_44, %c0_45, %c0_46] : memref<1x2x8x128xf32, #tpu.memory_space<vmem>>, vector<1x2x8x128xf32>
    tpu.vector_store %arg10[%c0_43, %c0_44, %c0_45, %c0_46], %114 {strides = array<i32>} : memref<1x2x8x128xf32, #tpu.memory_space<vmem>>, vector<1x2x8x128xf32>,
    %c0_i32_47 = arith.constant 0 : i32
    %116 = arith.cmpi sgt, %3, %c0_i32_47 : i32
    %117 = arith.extui %116 : i1 to i32
    %c0_i32_48 = arith.constant 0 : i32
    %118 = arith.cmpi ne, %117, %c0_i32_48 : i32
    scf.if %118 {
      %c0_i32_63 = arith.constant 0 : i32
      %c0_i32_64 = arith.constant 0 : i32
      %c0_i32_65 = arith.constant 0 : i32
      %c0_i32_66 = arith.constant 0 : i32
      %c0_i32_67 = arith.constant 0 : i32
      %c0_i32_68 = arith.constant 0 : i32
      %140 = tpu.memref_slice %arg8[%c0_i32_63, %c0_i32_66, %c0_i32_67, %c0_i32_68] : memref<2x2x16x128xf32, #tpu.memory_space<any>> -> memref<1x2x1x128xf32, #tpu.memory_space<any>>
      %141 = tpu.memref_squeeze %140 : memref<1x2x1x128xf32, #tpu.memory_space<any>> -> memref<2x1x128xf32, #tpu.memory_space<any>>
      %c0_i32_69 = arith.constant 0 : i32
      %c0_i32_70 = arith.constant 0 : i32
      %c0_i32_71 = arith.constant 0 : i32
      %142 = tpu.memref_slice %arg11[%c0_i32_64, %c0_i32_69, %c0_i32_70, %c0_i32_71] : memref<8x2x1x128xf32, #tpu.memory_space<vmem>> -> memref<1x2x1x128xf32, #tpu.memory_space<vmem>>
      %143 = tpu.memref_squeeze %142 : memref<1x2x1x128xf32, #tpu.memory_space<vmem>> -> memref<2x1x128xf32, #tpu.memory_space<vmem>>
      %144 = tpu.memref_slice %arg12[%c0_i32_65] : memref<8x!tpu.dma_semaphore, #tpu.memory_space<semaphore_mem>> -> memref<1x!tpu.dma_semaphore, #tpu.memory_space<semaphore_mem>>
      %145 = tpu.memref_squeeze %144 : memref<1x!tpu.dma_semaphore, #tpu.memory_space<semaphore_mem>> -> memref<!tpu.dma_semaphore, #tpu.memory_space<semaphore_mem>>
      tpu.wait_dma2 semaphore(%145 : memref<!tpu.dma_semaphore, #tpu.memory_space<semaphore_mem>>) src(%141 : memref<2x1x128xf32, #tpu.memory_space<any>>) dst(%143 : memref<2x1x128xf32, #tpu.memory_space<vmem>>)
      %c0_72 = arith.constant 0 : index
      %c0_73 = arith.constant 0 : index
      %c0_74 = arith.constant 0 : index
      %c0_75 = arith.constant 0 : index
      %146 = vector.load %arg11[%c0_72, %c0_73, %c0_74, %c0_75] : memref<8x2x1x128xf32, #tpu.memory_space<vmem>>, vector<1x2x1x128xf32>
      %147 = vector.shape_cast %146 : vector<1x2x1x128xf32> to vector<2x1x128xf32>
      %c0_76 = arith.constant 0 : index
      %c0_77 = arith.constant 0 : index
      %148 = arith.index_cast %8 : i32 to index
      %c0_78 = arith.constant 0 : index
      %149 = vector.load %arg9[%c0_76, %c0_77, %148, %c0_78] : memref<1x2x8x128xf32, #tpu.memory_space<vmem>>, vector<1x2x1x128xf32>
      %150 = vector.shape_cast %149 : vector<1x2x1x128xf32> to vector<2x1x128xf32>
      %151 = vector.shape_cast %147 : vector<2x1x128xf32> to vector<1x2x1x128xf32>
      tpu.vector_store %arg9[%c0_76, %c0_77, %148, %c0_78], %151 {strides = array<i32>} : memref<1x2x8x128xf32, #tpu.memory_space<vmem>>, vector<1x2x1x128xf32>,
      %c0_79 = arith.constant 0 : index
      %c0_80 = arith.constant 0 : index
      %152 = arith.index_cast %8 : i32 to index
      %c0_81 = arith.constant 0 : index
      %153 = vector.load %arg10[%c0_79, %c0_80, %152, %c0_81] : memref<1x2x8x128xf32, #tpu.memory_space<vmem>>, vector<1x2x1x128xf32>
      %154 = vector.shape_cast %153 : vector<1x2x1x128xf32> to vector<2x1x128xf32>
      %155 = vector.shape_cast %147 : vector<2x1x128xf32> to vector<1x2x1x128xf32>
      tpu.vector_store %arg10[%c0_79, %c0_80, %152, %c0_81], %155 {strides = array<i32>} : memref<1x2x8x128xf32, #tpu.memory_space<vmem>>, vector<1x2x1x128xf32>,
    } else {
    }
    %c1_i32_49 = arith.constant 1 : i32
    %119 = arith.cmpi sgt, %3, %c1_i32_49 : i32
    %120 = arith.extui %119 : i1 to i32
    %c0_i32_50 = arith.constant 0 : i32
    %121 = arith.cmpi ne, %120, %c0_i32_50 : i32
    scf.if %121 {
      %c0_i32_63 = arith.constant 0 : i32
      %c1_i32_64 = arith.constant 1 : i32
      %c1_i32_65 = arith.constant 1 : i32
      %c0_i32_66 = arith.constant 0 : i32
      %c0_i32_67 = arith.constant 0 : i32
      %c0_i32_68 = arith.constant 0 : i32
      %140 = tpu.memref_slice %arg8[%c0_i32_63, %c0_i32_66, %c0_i32_67, %c0_i32_68] : memref<2x2x16x128xf32, #tpu.memory_space<any>> -> memref<1x2x1x128xf32, #tpu.memory_space<any>>
      %141 = tpu.memref_squeeze %140 : memref<1x2x1x128xf32, #tpu.memory_space<any>> -> memref<2x1x128xf32, #tpu.memory_space<any>>
      %c0_i32_69 = arith.constant 0 : i32
      %c0_i32_70 = arith.constant 0 : i32
      %c0_i32_71 = arith.constant 0 : i32
      %142 = tpu.memref_slice %arg11[%c1_i32_64, %c0_i32_69, %c0_i32_70, %c0_i32_71] : memref<8x2x1x128xf32, #tpu.memory_space<vmem>> -> memref<1x2x1x128xf32, #tpu.memory_space<vmem>>
      %143 = tpu.memref_squeeze %142 : memref<1x2x1x128xf32, #tpu.memory_space<vmem>> -> memref<2x1x128xf32, #tpu.memory_space<vmem>>
      %144 = tpu.memref_slice %arg12[%c1_i32_65] : memref<8x!tpu.dma_semaphore, #tpu.memory_space<semaphore_mem>> -> memref<1x!tpu.dma_semaphore, #tpu.memory_space<semaphore_mem>>
      %145 = tpu.memref_squeeze %144 : memref<1x!tpu.dma_semaphore, #tpu.memory_space<semaphore_mem>> -> memref<!tpu.dma_semaphore, #tpu.memory_space<semaphore_mem>>
      tpu.wait_dma2 semaphore(%145 : memref<!tpu.dma_semaphore, #tpu.memory_space<semaphore_mem>>) src(%141 : memref<2x1x128xf32, #tpu.memory_space<any>>) dst(%143 : memref<2x1x128xf32, #tpu.memory_space<vmem>>)
      %c1 = arith.constant 1 : index
      %c0_72 = arith.constant 0 : index
      %c0_73 = arith.constant 0 : index
      %c0_74 = arith.constant 0 : index
      %146 = vector.load %arg11[%c1, %c0_72, %c0_73, %c0_74] : memref<8x2x1x128xf32, #tpu.memory_space<vmem>>, vector<1x2x1x128xf32>
      %147 = vector.shape_cast %146 : vector<1x2x1x128xf32> to vector<2x1x128xf32>
      %c0_75 = arith.constant 0 : index
      %c0_76 = arith.constant 0 : index
      %148 = arith.index_cast %12 : i32 to index
      %c0_77 = arith.constant 0 : index
      %149 = vector.load %arg9[%c0_75, %c0_76, %148, %c0_77] : memref<1x2x8x128xf32, #tpu.memory_space<vmem>>, vector<1x2x1x128xf32>
      %150 = vector.shape_cast %149 : vector<1x2x1x128xf32> to vector<2x1x128xf32>
      %151 = vector.shape_cast %147 : vector<2x1x128xf32> to vector<1x2x1x128xf32>
      tpu.vector_store %arg9[%c0_75, %c0_76, %148, %c0_77], %151 {strides = array<i32>} : memref<1x2x8x128xf32, #tpu.memory_space<vmem>>, vector<1x2x1x128xf32>,
      %c0_78 = arith.constant 0 : index
      %c0_79 = arith.constant 0 : index
      %152 = arith.index_cast %12 : i32 to index
      %c0_80 = arith.constant 0 : index
      %153 = vector.load %arg10[%c0_78, %c0_79, %152, %c0_80] : memref<1x2x8x128xf32, #tpu.memory_space<vmem>>, vector<1x2x1x128xf32>
      %154 = vector.shape_cast %153 : vector<1x2x1x128xf32> to vector<2x1x128xf32>
      %155 = vector.shape_cast %147 : vector<2x1x128xf32> to vector<1x2x1x128xf32>
      tpu.vector_store %arg10[%c0_78, %c0_79, %152, %c0_80], %155 {strides = array<i32>} : memref<1x2x8x128xf32, #tpu.memory_space<vmem>>, vector<1x2x1x128xf32>,
    } else {
    }
    %c2_i32_51 = arith.constant 2 : i32
    %122 = arith.cmpi sgt, %3, %c2_i32_51 : i32
    %123 = arith.extui %122 : i1 to i32
    %c0_i32_52 = arith.constant 0 : i32
    %124 = arith.cmpi ne, %123, %c0_i32_52 : i32
    scf.if %124 {
      %c0_i32_63 = arith.constant 0 : i32
      %c2_i32_64 = arith.constant 2 : i32
      %c2_i32_65 = arith.constant 2 : i32
      %c0_i32_66 = arith.constant 0 : i32
      %c0_i32_67 = arith.constant 0 : i32
      %c0_i32_68 = arith.constant 0 : i32
      %140 = tpu.memref_slice %arg8[%c0_i32_63, %c0_i32_66, %c0_i32_67, %c0_i32_68] : memref<2x2x16x128xf32, #tpu.memory_space<any>> -> memref<1x2x1x128xf32, #tpu.memory_space<any>>
      %141 = tpu.memref_squeeze %140 : memref<1x2x1x128xf32, #tpu.memory_space<any>> -> memref<2x1x128xf32, #tpu.memory_space<any>>
      %c0_i32_69 = arith.constant 0 : i32
      %c0_i32_70 = arith.constant 0 : i32
      %c0_i32_71 = arith.constant 0 : i32
      %142 = tpu.memref_slice %arg11[%c2_i32_64, %c0_i32_69, %c0_i32_70, %c0_i32_71] : memref<8x2x1x128xf32, #tpu.memory_space<vmem>> -> memref<1x2x1x128xf32, #tpu.memory_space<vmem>>
      %143 = tpu.memref_squeeze %142 : memref<1x2x1x128xf32, #tpu.memory_space<vmem>> -> memref<2x1x128xf32, #tpu.memory_space<vmem>>
      %144 = tpu.memref_slice %arg12[%c2_i32_65] : memref<8x!tpu.dma_semaphore, #tpu.memory_space<semaphore_mem>> -> memref<1x!tpu.dma_semaphore, #tpu.memory_space<semaphore_mem>>
      %145 = tpu.memref_squeeze %144 : memref<1x!tpu.dma_semaphore, #tpu.memory_space<semaphore_mem>> -> memref<!tpu.dma_semaphore, #tpu.memory_space<semaphore_mem>>
      tpu.wait_dma2 semaphore(%145 : memref<!tpu.dma_semaphore, #tpu.memory_space<semaphore_mem>>) src(%141 : memref<2x1x128xf32, #tpu.memory_space<any>>) dst(%143 : memref<2x1x128xf32, #tpu.memory_space<vmem>>)
      %c2 = arith.constant 2 : index
      %c0_72 = arith.constant 0 : index
      %c0_73 = arith.constant 0 : index
      %c0_74 = arith.constant 0 : index
      %146 = vector.load %arg11[%c2, %c0_72, %c0_73, %c0_74] : memref<8x2x1x128xf32, #tpu.memory_space<vmem>>, vector<1x2x1x128xf32>
      %147 = vector.shape_cast %146 : vector<1x2x1x128xf32> to vector<2x1x128xf32>
      %c0_75 = arith.constant 0 : index
      %c0_76 = arith.constant 0 : index
      %148 = arith.index_cast %16 : i32 to index
      %c0_77 = arith.constant 0 : index
      %149 = vector.load %arg9[%c0_75, %c0_76, %148, %c0_77] : memref<1x2x8x128xf32, #tpu.memory_space<vmem>>, vector<1x2x1x128xf32>
      %150 = vector.shape_cast %149 : vector<1x2x1x128xf32> to vector<2x1x128xf32>
      %151 = vector.shape_cast %147 : vector<2x1x128xf32> to vector<1x2x1x128xf32>
      tpu.vector_store %arg9[%c0_75, %c0_76, %148, %c0_77], %151 {strides = array<i32>} : memref<1x2x8x128xf32, #tpu.memory_space<vmem>>, vector<1x2x1x128xf32>,
      %c0_78 = arith.constant 0 : index
      %c0_79 = arith.constant 0 : index
      %152 = arith.index_cast %16 : i32 to index
      %c0_80 = arith.constant 0 : index
      %153 = vector.load %arg10[%c0_78, %c0_79, %152, %c0_80] : memref<1x2x8x128xf32, #tpu.memory_space<vmem>>, vector<1x2x1x128xf32>
      %154 = vector.shape_cast %153 : vector<1x2x1x128xf32> to vector<2x1x128xf32>
      %155 = vector.shape_cast %147 : vector<2x1x128xf32> to vector<1x2x1x128xf32>
      tpu.vector_store %arg10[%c0_78, %c0_79, %152, %c0_80], %155 {strides = array<i32>} : memref<1x2x8x128xf32, #tpu.memory_space<vmem>>, vector<1x2x1x128xf32>,
    } else {
    }
    %c3_i32_53 = arith.constant 3 : i32
    %125 = arith.cmpi sgt, %3, %c3_i32_53 : i32
    %126 = arith.extui %125 : i1 to i32
    %c0_i32_54 = arith.constant 0 : i32
    %127 = arith.cmpi ne, %126, %c0_i32_54 : i32
    scf.if %127 {
      %c0_i32_63 = arith.constant 0 : i32
      %c3_i32_64 = arith.constant 3 : i32
      %c3_i32_65 = arith.constant 3 : i32
      %c0_i32_66 = arith.constant 0 : i32
      %c0_i32_67 = arith.constant 0 : i32
      %c0_i32_68 = arith.constant 0 : i32
      %140 = tpu.memref_slice %arg8[%c0_i32_63, %c0_i32_66, %c0_i32_67, %c0_i32_68] : memref<2x2x16x128xf32, #tpu.memory_space<any>> -> memref<1x2x1x128xf32, #tpu.memory_space<any>>
      %141 = tpu.memref_squeeze %140 : memref<1x2x1x128xf32, #tpu.memory_space<any>> -> memref<2x1x128xf32, #tpu.memory_space<any>>
      %c0_i32_69 = arith.constant 0 : i32
      %c0_i32_70 = arith.constant 0 : i32
      %c0_i32_71 = arith.constant 0 : i32
      %142 = tpu.memref_slice %arg11[%c3_i32_64, %c0_i32_69, %c0_i32_70, %c0_i32_71] : memref<8x2x1x128xf32, #tpu.memory_space<vmem>> -> memref<1x2x1x128xf32, #tpu.memory_space<vmem>>
      %143 = tpu.memref_squeeze %142 : memref<1x2x1x128xf32, #tpu.memory_space<vmem>> -> memref<2x1x128xf32, #tpu.memory_space<vmem>>
      %144 = tpu.memref_slice %arg12[%c3_i32_65] : memref<8x!tpu.dma_semaphore, #tpu.memory_space<semaphore_mem>> -> memref<1x!tpu.dma_semaphore, #tpu.memory_space<semaphore_mem>>
      %145 = tpu.memref_squeeze %144 : memref<1x!tpu.dma_semaphore, #tpu.memory_space<semaphore_mem>> -> memref<!tpu.dma_semaphore, #tpu.memory_space<semaphore_mem>>
      tpu.wait_dma2 semaphore(%145 : memref<!tpu.dma_semaphore, #tpu.memory_space<semaphore_mem>>) src(%141 : memref<2x1x128xf32, #tpu.memory_space<any>>) dst(%143 : memref<2x1x128xf32, #tpu.memory_space<vmem>>)
      %c3 = arith.constant 3 : index
      %c0_72 = arith.constant 0 : index
      %c0_73 = arith.constant 0 : index
      %c0_74 = arith.constant 0 : index
      %146 = vector.load %arg11[%c3, %c0_72, %c0_73, %c0_74] : memref<8x2x1x128xf32, #tpu.memory_space<vmem>>, vector<1x2x1x128xf32>
      %147 = vector.shape_cast %146 : vector<1x2x1x128xf32> to vector<2x1x128xf32>
      %c0_75 = arith.constant 0 : index
      %c0_76 = arith.constant 0 : index
      %148 = arith.index_cast %20 : i32 to index
      %c0_77 = arith.constant 0 : index
      %149 = vector.load %arg9[%c0_75, %c0_76, %148, %c0_77] : memref<1x2x8x128xf32, #tpu.memory_space<vmem>>, vector<1x2x1x128xf32>
      %150 = vector.shape_cast %149 : vector<1x2x1x128xf32> to vector<2x1x128xf32>
      %151 = vector.shape_cast %147 : vector<2x1x128xf32> to vector<1x2x1x128xf32>
      tpu.vector_store %arg9[%c0_75, %c0_76, %148, %c0_77], %151 {strides = array<i32>} : memref<1x2x8x128xf32, #tpu.memory_space<vmem>>, vector<1x2x1x128xf32>,
      %c0_78 = arith.constant 0 : index
      %c0_79 = arith.constant 0 : index
      %152 = arith.index_cast %20 : i32 to index
      %c0_80 = arith.constant 0 : index
      %153 = vector.load %arg10[%c0_78, %c0_79, %152, %c0_80] : memref<1x2x8x128xf32, #tpu.memory_space<vmem>>, vector<1x2x1x128xf32>
      %154 = vector.shape_cast %153 : vector<1x2x1x128xf32> to vector<2x1x128xf32>
      %155 = vector.shape_cast %147 : vector<2x1x128xf32> to vector<1x2x1x128xf32>
      tpu.vector_store %arg10[%c0_78, %c0_79, %152, %c0_80], %155 {strides = array<i32>} : memref<1x2x8x128xf32, #tpu.memory_space<vmem>>, vector<1x2x1x128xf32>,
    } else {
    }
    %c4_i32_55 = arith.constant 4 : i32
    %128 = arith.cmpi sgt, %3, %c4_i32_55 : i32
    %129 = arith.extui %128 : i1 to i32
    %c0_i32_56 = arith.constant 0 : i32
    %130 = arith.cmpi ne, %129, %c0_i32_56 : i32
    scf.if %130 {
      %c0_i32_63 = arith.constant 0 : i32
      %c4_i32_64 = arith.constant 4 : i32
      %c4_i32_65 = arith.constant 4 : i32
      %c0_i32_66 = arith.constant 0 : i32
      %c0_i32_67 = arith.constant 0 : i32
      %c0_i32_68 = arith.constant 0 : i32
      %140 = tpu.memref_slice %arg8[%c0_i32_63, %c0_i32_66, %c0_i32_67, %c0_i32_68] : memref<2x2x16x128xf32, #tpu.memory_space<any>> -> memref<1x2x1x128xf32, #tpu.memory_space<any>>
      %141 = tpu.memref_squeeze %140 : memref<1x2x1x128xf32, #tpu.memory_space<any>> -> memref<2x1x128xf32, #tpu.memory_space<any>>
      %c0_i32_69 = arith.constant 0 : i32
      %c0_i32_70 = arith.constant 0 : i32
      %c0_i32_71 = arith.constant 0 : i32
      %142 = tpu.memref_slice %arg11[%c4_i32_64, %c0_i32_69, %c0_i32_70, %c0_i32_71] : memref<8x2x1x128xf32, #tpu.memory_space<vmem>> -> memref<1x2x1x128xf32, #tpu.memory_space<vmem>>
      %143 = tpu.memref_squeeze %142 : memref<1x2x1x128xf32, #tpu.memory_space<vmem>> -> memref<2x1x128xf32, #tpu.memory_space<vmem>>
      %144 = tpu.memref_slice %arg12[%c4_i32_65] : memref<8x!tpu.dma_semaphore, #tpu.memory_space<semaphore_mem>> -> memref<1x!tpu.dma_semaphore, #tpu.memory_space<semaphore_mem>>
      %145 = tpu.memref_squeeze %144 : memref<1x!tpu.dma_semaphore, #tpu.memory_space<semaphore_mem>> -> memref<!tpu.dma_semaphore, #tpu.memory_space<semaphore_mem>>
      tpu.wait_dma2 semaphore(%145 : memref<!tpu.dma_semaphore, #tpu.memory_space<semaphore_mem>>) src(%141 : memref<2x1x128xf32, #tpu.memory_space<any>>) dst(%143 : memref<2x1x128xf32, #tpu.memory_space<vmem>>)
      %c4 = arith.constant 4 : index
      %c0_72 = arith.constant 0 : index
      %c0_73 = arith.constant 0 : index
      %c0_74 = arith.constant 0 : index
      %146 = vector.load %arg11[%c4, %c0_72, %c0_73, %c0_74] : memref<8x2x1x128xf32, #tpu.memory_space<vmem>>, vector<1x2x1x128xf32>
      %147 = vector.shape_cast %146 : vector<1x2x1x128xf32> to vector<2x1x128xf32>
      %c0_75 = arith.constant 0 : index
      %c0_76 = arith.constant 0 : index
      %148 = arith.index_cast %24 : i32 to index
      %c0_77 = arith.constant 0 : index
      %149 = vector.load %arg9[%c0_75, %c0_76, %148, %c0_77] : memref<1x2x8x128xf32, #tpu.memory_space<vmem>>, vector<1x2x1x128xf32>
      %150 = vector.shape_cast %149 : vector<1x2x1x128xf32> to vector<2x1x128xf32>
      %151 = vector.shape_cast %147 : vector<2x1x128xf32> to vector<1x2x1x128xf32>
      tpu.vector_store %arg9[%c0_75, %c0_76, %148, %c0_77], %151 {strides = array<i32>} : memref<1x2x8x128xf32, #tpu.memory_space<vmem>>, vector<1x2x1x128xf32>,
      %c0_78 = arith.constant 0 : index
      %c0_79 = arith.constant 0 : index
      %152 = arith.index_cast %24 : i32 to index
      %c0_80 = arith.constant 0 : index
      %153 = vector.load %arg10[%c0_78, %c0_79, %152, %c0_80] : memref<1x2x8x128xf32, #tpu.memory_space<vmem>>, vector<1x2x1x128xf32>
      %154 = vector.shape_cast %153 : vector<1x2x1x128xf32> to vector<2x1x128xf32>
      %155 = vector.shape_cast %147 : vector<2x1x128xf32> to vector<1x2x1x128xf32>
      tpu.vector_store %arg10[%c0_78, %c0_79, %152, %c0_80], %155 {strides = array<i32>} : memref<1x2x8x128xf32, #tpu.memory_space<vmem>>, vector<1x2x1x128xf32>,
    } else {
    }
    %c5_i32_57 = arith.constant 5 : i32
    %131 = arith.cmpi sgt, %3, %c5_i32_57 : i32
    %132 = arith.extui %131 : i1 to i32
    %c0_i32_58 = arith.constant 0 : i32
    %133 = arith.cmpi ne, %132, %c0_i32_58 : i32
    scf.if %133 {
      %c0_i32_63 = arith.constant 0 : i32
      %c5_i32_64 = arith.constant 5 : i32
      %c5_i32_65 = arith.constant 5 : i32
      %c0_i32_66 = arith.constant 0 : i32
      %c0_i32_67 = arith.constant 0 : i32
      %c0_i32_68 = arith.constant 0 : i32
      %140 = tpu.memref_slice %arg8[%c0_i32_63, %c0_i32_66, %c0_i32_67, %c0_i32_68] : memref<2x2x16x128xf32, #tpu.memory_space<any>> -> memref<1x2x1x128xf32, #tpu.memory_space<any>>
      %141 = tpu.memref_squeeze %140 : memref<1x2x1x128xf32, #tpu.memory_space<any>> -> memref<2x1x128xf32, #tpu.memory_space<any>>
      %c0_i32_69 = arith.constant 0 : i32
      %c0_i32_70 = arith.constant 0 : i32
      %c0_i32_71 = arith.constant 0 : i32
      %142 = tpu.memref_slice %arg11[%c5_i32_64, %c0_i32_69, %c0_i32_70, %c0_i32_71] : memref<8x2x1x128xf32, #tpu.memory_space<vmem>> -> memref<1x2x1x128xf32, #tpu.memory_space<vmem>>
      %143 = tpu.memref_squeeze %142 : memref<1x2x1x128xf32, #tpu.memory_space<vmem>> -> memref<2x1x128xf32, #tpu.memory_space<vmem>>
      %144 = tpu.memref_slice %arg12[%c5_i32_65] : memref<8x!tpu.dma_semaphore, #tpu.memory_space<semaphore_mem>> -> memref<1x!tpu.dma_semaphore, #tpu.memory_space<semaphore_mem>>
      %145 = tpu.memref_squeeze %144 : memref<1x!tpu.dma_semaphore, #tpu.memory_space<semaphore_mem>> -> memref<!tpu.dma_semaphore, #tpu.memory_space<semaphore_mem>>
      tpu.wait_dma2 semaphore(%145 : memref<!tpu.dma_semaphore, #tpu.memory_space<semaphore_mem>>) src(%141 : memref<2x1x128xf32, #tpu.memory_space<any>>) dst(%143 : memref<2x1x128xf32, #tpu.memory_space<vmem>>)
      %c5 = arith.constant 5 : index
      %c0_72 = arith.constant 0 : index
      %c0_73 = arith.constant 0 : index
      %c0_74 = arith.constant 0 : index
      %146 = vector.load %arg11[%c5, %c0_72, %c0_73, %c0_74] : memref<8x2x1x128xf32, #tpu.memory_space<vmem>>, vector<1x2x1x128xf32>
      %147 = vector.shape_cast %146 : vector<1x2x1x128xf32> to vector<2x1x128xf32>
      %c0_75 = arith.constant 0 : index
      %c0_76 = arith.constant 0 : index
      %148 = arith.index_cast %28 : i32 to index
      %c0_77 = arith.constant 0 : index
      %149 = vector.load %arg9[%c0_75, %c0_76, %148, %c0_77] : memref<1x2x8x128xf32, #tpu.memory_space<vmem>>, vector<1x2x1x128xf32>
      %150 = vector.shape_cast %149 : vector<1x2x1x128xf32> to vector<2x1x128xf32>
      %151 = vector.shape_cast %147 : vector<2x1x128xf32> to vector<1x2x1x128xf32>
      tpu.vector_store %arg9[%c0_75, %c0_76, %148, %c0_77], %151 {strides = array<i32>} : memref<1x2x8x128xf32, #tpu.memory_space<vmem>>, vector<1x2x1x128xf32>,
      %c0_78 = arith.constant 0 : index
      %c0_79 = arith.constant 0 : index
      %152 = arith.index_cast %28 : i32 to index
      %c0_80 = arith.constant 0 : index
      %153 = vector.load %arg10[%c0_78, %c0_79, %152, %c0_80] : memref<1x2x8x128xf32, #tpu.memory_space<vmem>>, vector<1x2x1x128xf32>
      %154 = vector.shape_cast %153 : vector<1x2x1x128xf32> to vector<2x1x128xf32>
      %155 = vector.shape_cast %147 : vector<2x1x128xf32> to vector<1x2x1x128xf32>
      tpu.vector_store %arg10[%c0_78, %c0_79, %152, %c0_80], %155 {strides = array<i32>} : memref<1x2x8x128xf32, #tpu.memory_space<vmem>>, vector<1x2x1x128xf32>,
    } else {
    }
    %c6_i32_59 = arith.constant 6 : i32
    %134 = arith.cmpi sgt, %3, %c6_i32_59 : i32
    %135 = arith.extui %134 : i1 to i32
    %c0_i32_60 = arith.constant 0 : i32
    %136 = arith.cmpi ne, %135, %c0_i32_60 : i32
    scf.if %136 {
      %c0_i32_63 = arith.constant 0 : i32
      %c6_i32_64 = arith.constant 6 : i32
      %c6_i32_65 = arith.constant 6 : i32
      %c0_i32_66 = arith.constant 0 : i32
      %c0_i32_67 = arith.constant 0 : i32
      %c0_i32_68 = arith.constant 0 : i32
      %140 = tpu.memref_slice %arg8[%c0_i32_63, %c0_i32_66, %c0_i32_67, %c0_i32_68] : memref<2x2x16x128xf32, #tpu.memory_space<any>> -> memref<1x2x1x128xf32, #tpu.memory_space<any>>
      %141 = tpu.memref_squeeze %140 : memref<1x2x1x128xf32, #tpu.memory_space<any>> -> memref<2x1x128xf32, #tpu.memory_space<any>>
      %c0_i32_69 = arith.constant 0 : i32
      %c0_i32_70 = arith.constant 0 : i32
      %c0_i32_71 = arith.constant 0 : i32
      %142 = tpu.memref_slice %arg11[%c6_i32_64, %c0_i32_69, %c0_i32_70, %c0_i32_71] : memref<8x2x1x128xf32, #tpu.memory_space<vmem>> -> memref<1x2x1x128xf32, #tpu.memory_space<vmem>>
      %143 = tpu.memref_squeeze %142 : memref<1x2x1x128xf32, #tpu.memory_space<vmem>> -> memref<2x1x128xf32, #tpu.memory_space<vmem>>
      %144 = tpu.memref_slice %arg12[%c6_i32_65] : memref<8x!tpu.dma_semaphore, #tpu.memory_space<semaphore_mem>> -> memref<1x!tpu.dma_semaphore, #tpu.memory_space<semaphore_mem>>
      %145 = tpu.memref_squeeze %144 : memref<1x!tpu.dma_semaphore, #tpu.memory_space<semaphore_mem>> -> memref<!tpu.dma_semaphore, #tpu.memory_space<semaphore_mem>>
      tpu.wait_dma2 semaphore(%145 : memref<!tpu.dma_semaphore, #tpu.memory_space<semaphore_mem>>) src(%141 : memref<2x1x128xf32, #tpu.memory_space<any>>) dst(%143 : memref<2x1x128xf32, #tpu.memory_space<vmem>>)
      %c6 = arith.constant 6 : index
      %c0_72 = arith.constant 0 : index
      %c0_73 = arith.constant 0 : index
      %c0_74 = arith.constant 0 : index
      %146 = vector.load %arg11[%c6, %c0_72, %c0_73, %c0_74] : memref<8x2x1x128xf32, #tpu.memory_space<vmem>>, vector<1x2x1x128xf32>
      %147 = vector.shape_cast %146 : vector<1x2x1x128xf32> to vector<2x1x128xf32>
      %c0_75 = arith.constant 0 : index
      %c0_76 = arith.constant 0 : index
      %148 = arith.index_cast %32 : i32 to index
      %c0_77 = arith.constant 0 : index
      %149 = vector.load %arg9[%c0_75, %c0_76, %148, %c0_77] : memref<1x2x8x128xf32, #tpu.memory_space<vmem>>, vector<1x2x1x128xf32>
      %150 = vector.shape_cast %149 : vector<1x2x1x128xf32> to vector<2x1x128xf32>
      %151 = vector.shape_cast %147 : vector<2x1x128xf32> to vector<1x2x1x128xf32>
      tpu.vector_store %arg9[%c0_75, %c0_76, %148, %c0_77], %151 {strides = array<i32>} : memref<1x2x8x128xf32, #tpu.memory_space<vmem>>, vector<1x2x1x128xf32>,
      %c0_78 = arith.constant 0 : index
      %c0_79 = arith.constant 0 : index
      %152 = arith.index_cast %32 : i32 to index
      %c0_80 = arith.constant 0 : index
      %153 = vector.load %arg10[%c0_78, %c0_79, %152, %c0_80] : memref<1x2x8x128xf32, #tpu.memory_space<vmem>>, vector<1x2x1x128xf32>
      %154 = vector.shape_cast %153 : vector<1x2x1x128xf32> to vector<2x1x128xf32>
      %155 = vector.shape_cast %147 : vector<2x1x128xf32> to vector<1x2x1x128xf32>
      tpu.vector_store %arg10[%c0_78, %c0_79, %152, %c0_80], %155 {strides = array<i32>} : memref<1x2x8x128xf32, #tpu.memory_space<vmem>>, vector<1x2x1x128xf32>,
    } else {
    }
    %c7_i32_61 = arith.constant 7 : i32
    %137 = arith.cmpi sgt, %3, %c7_i32_61 : i32
    %138 = arith.extui %137 : i1 to i32
    %c0_i32_62 = arith.constant 0 : i32
    %139 = arith.cmpi ne, %138, %c0_i32_62 : i32
    scf.if %139 {
      %c0_i32_63 = arith.constant 0 : i32
      %c7_i32_64 = arith.constant 7 : i32
      %c7_i32_65 = arith.constant 7 : i32
      %c0_i32_66 = arith.constant 0 : i32
      %c0_i32_67 = arith.constant 0 : i32
      %c0_i32_68 = arith.constant 0 : i32
      %140 = tpu.memref_slice %arg8[%c0_i32_63, %c0_i32_66, %c0_i32_67, %c0_i32_68] : memref<2x2x16x128xf32, #tpu.memory_space<any>> -> memref<1x2x1x128xf32, #tpu.memory_space<any>>
      %141 = tpu.memref_squeeze %140 : memref<1x2x1x128xf32, #tpu.memory_space<any>> -> memref<2x1x128xf32, #tpu.memory_space<any>>
      %c0_i32_69 = arith.constant 0 : i32
      %c0_i32_70 = arith.constant 0 : i32
      %c0_i32_71 = arith.constant 0 : i32
      %142 = tpu.memref_slice %arg11[%c7_i32_64, %c0_i32_69, %c0_i32_70, %c0_i32_71] : memref<8x2x1x128xf32, #tpu.memory_space<vmem>> -> memref<1x2x1x128xf32, #tpu.memory_space<vmem>>
      %143 = tpu.memref_squeeze %142 : memref<1x2x1x128xf32, #tpu.memory_space<vmem>> -> memref<2x1x128xf32, #tpu.memory_space<vmem>>
      %144 = tpu.memref_slice %arg12[%c7_i32_65] : memref<8x!tpu.dma_semaphore, #tpu.memory_space<semaphore_mem>> -> memref<1x!tpu.dma_semaphore, #tpu.memory_space<semaphore_mem>>
      %145 = tpu.memref_squeeze %144 : memref<1x!tpu.dma_semaphore, #tpu.memory_space<semaphore_mem>> -> memref<!tpu.dma_semaphore, #tpu.memory_space<semaphore_mem>>
      tpu.wait_dma2 semaphore(%145 : memref<!tpu.dma_semaphore, #tpu.memory_space<semaphore_mem>>) src(%141 : memref<2x1x128xf32, #tpu.memory_space<any>>) dst(%143 : memref<2x1x128xf32, #tpu.memory_space<vmem>>)
      %c7 = arith.constant 7 : index
      %c0_72 = arith.constant 0 : index
      %c0_73 = arith.constant 0 : index
      %c0_74 = arith.constant 0 : index
      %146 = vector.load %arg11[%c7, %c0_72, %c0_73, %c0_74] : memref<8x2x1x128xf32, #tpu.memory_space<vmem>>, vector<1x2x1x128xf32>
      %147 = vector.shape_cast %146 : vector<1x2x1x128xf32> to vector<2x1x128xf32>
      %c0_75 = arith.constant 0 : index
      %c0_76 = arith.constant 0 : index
      %148 = arith.index_cast %36 : i32 to index
      %c0_77 = arith.constant 0 : index
      %149 = vector.load %arg9[%c0_75, %c0_76, %148, %c0_77] : memref<1x2x8x128xf32, #tpu.memory_space<vmem>>, vector<1x2x1x128xf32>
      %150 = vector.shape_cast %149 : vector<1x2x1x128xf32> to vector<2x1x128xf32>
      %151 = vector.shape_cast %147 : vector<2x1x128xf32> to vector<1x2x1x128xf32>
      tpu.vector_store %arg9[%c0_75, %c0_76, %148, %c0_77], %151 {strides = array<i32>} : memref<1x2x8x128xf32, #tpu.memory_space<vmem>>, vector<1x2x1x128xf32>,
      %c0_78 = arith.constant 0 : index
      %c0_79 = arith.constant 0 : index
      %152 = arith.index_cast %36 : i32 to index
      %c0_80 = arith.constant 0 : index
      %153 = vector.load %arg10[%c0_78, %c0_79, %152, %c0_80] : memref<1x2x8x128xf32, #tpu.memory_space<vmem>>, vector<1x2x1x128xf32>
      %154 = vector.shape_cast %153 : vector<1x2x1x128xf32> to vector<2x1x128xf32>
      %155 = vector.shape_cast %147 : vector<2x1x128xf32> to vector<1x2x1x128xf32>
      tpu.vector_store %arg10[%c0_78, %c0_79, %152, %c0_80], %155 {strides = array<i32>} : memref<1x2x8x128xf32, #tpu.memory_space<vmem>>, vector<1x2x1x128xf32>,
    } else {
    }
    return
  }
  func.func @transform_0(%arg0: i32, %arg1: i32, %arg2: memref<2x2xi32, #tpu.memory_space<smem>>, %arg3: memref<2x16xi32, #tpu.memory_space<smem>>, %arg4: memref<2x16xi32, #tpu.memory_space<smem>>) -> (i32, i32, i32) {
    %c0_i32 = arith.constant 0 : i32
    %c0_i32_0 = arith.constant 0 : i32
    return %arg0, %arg1, %c0_i32 : i32, i32, i32
  }
  func.func @transform_1(%arg0: i32, %arg1: i32, %arg2: memref<2x2xi32, #tpu.memory_space<smem>>, %arg3: memref<2x16xi32, #tpu.memory_space<smem>>, %arg4: memref<2x16xi32, #tpu.memory_space<smem>>) -> (i32, i32, i32, i32) {
    %c0_i32 = arith.constant 0 : i32
    %c0_i32_0 = arith.constant 0 : i32
    %c0_i32_1 = arith.constant 0 : i32
    return %arg0, %c0_i32, %arg1, %c0_i32_0 : i32, i32, i32, i32
  }
  func.func @transform_2(%arg0: i32, %arg1: i32, %arg2: memref<2x2xi32, #tpu.memory_space<smem>>, %arg3: memref<2x16xi32, #tpu.memory_space<smem>>, %arg4: memref<2x16xi32, #tpu.memory_space<smem>>) -> (i32, i32, i32, i32) {
    %c0_i32 = arith.constant 0 : i32
    %c0_i32_0 = arith.constant 0 : i32
    %c0_i32_1 = arith.constant 0 : i32
    return %arg0, %c0_i32, %arg1, %c0_i32_0 : i32, i32, i32, i32
  }
  func.func @transform_4(%arg0: i32, %arg1: i32, %arg2: memref<2x2xi32, #tpu.memory_space<smem>>, %arg3: memref<2x16xi32, #tpu.memory_space<smem>>, %arg4: memref<2x16xi32, #tpu.memory_space<smem>>) -> (i32, i32, i32, i32) {
    %c0_i32 = arith.constant 0 : i32
    %c0_i32_0 = arith.constant 0 : i32
    %c0_i32_1 = arith.constant 0 : i32
    return %arg0, %c0_i32, %arg1, %c0_i32_0 : i32, i32, i32, i32
  }
  func.func @transform_5(%arg0: i32, %arg1: i32, %arg2: memref<2x2xi32, #tpu.memory_space<smem>>, %arg3: memref<2x16xi32, #tpu.memory_space<smem>>, %arg4: memref<2x16xi32, #tpu.memory_space<smem>>) -> (i32, i32, i32, i32) {
    %c0_i32 = arith.constant 0 : i32
    %c0_i32_0 = arith.constant 0 : i32
    %c0_i32_1 = arith.constant 0 : i32
    return %arg0, %c0_i32, %arg1, %c0_i32_0 : i32, i32, i32, i32
  }
}

</mosaic_0001>

<bundles_post_ra>
// kernel: tpu_custom_call.1
= control target key start
LH: loop header
LB: loop body
LE: loop exit
PB: predicated region body
PF: predicated region fallthrough
CT: control target
= control target key end

     0   :  { %s2368_s0 = inlined_call_operand.vmem [shape: s32[2,2], index: 0, kind: input, shape index: {}]   ;;  %s2369_s3 = inlined_call_operand.vmem [shape: s32[2,16,1], index: 3, kind: input, shape index: {}]   ;;  %s2370_s4 = inlined_call_operand.hbm [shape: f32[2,2,16,128], index: 4, kind: input, shape index: {}]   ;;  %s2371_s5 = inlined_call_operand.hbm [shape: f32[2,2,16,128], index: 5, kind: input, shape index: {}]   ;;  %s2372_s6 = inlined_call_operand.hbm [shape: f32[2,2,16,128], index: 6, kind: input, shape index: {}]   ;;  %s2373_s7 = inlined_call_operand.hbm [shape: f32[2,2,16,128], index: 7, kind: output, shape index: {0}]   ;;  %s2374_s8 = inlined_call_operand.hbm [shape: f32[2,2,16,128], index: 8, kind: output, shape index: {1}]   ;;  %s2375_s1 = inlined_call_operand.vmem [shape: s32[2,16], index: 1, kind: input, shape index: {}]   ;;  %s2376_s2 = inlined_call_operand.vmem [shape: s32[2,16], index: 2, kind: input, shape index: {}]  }
   0x1   :  { %2412 = sst [smem:[#allocation55_spill]] %s2369_s3  ;;  %s14_s29 = sshll.u32 %s2368_s0, 4  ;;  %s15_s29 = int_to_ptr.vmem [resolvable:$true] %s14_s29 }
   0x2   :  { %2413 = sst [smem:[#allocation56_spill]] %s2370_s4  ;;  %s18_s10 = sshll.u32 %s2375_s1, 4  ;;  %s19_s10 = int_to_ptr.vmem [resolvable:$true] %s18_s10 }
   0x3   :  { %2414 = sst [smem:[#allocation57_spill]] %s2371_s5  ;;  %s1242_s11 = scalar_lea.vmem %s15_s29, 32 }
   0x4   :  { %2415 = sst [smem:[#allocation58_spill]] %s2373_s7  ;;  %p1243_p0 = scmp.ne.s32.totalorder %s15_s29, %s1242_s11 }
   0x5   :  { %2416 = sst [smem:[#allocation59_spill]] %s2374_s8  ;;  %p1247_p1 = scmp.lt.s32.totalorder %s15_s29, %s15_s29 }
   0x6   :  { %p1248_p2 = scmp.lt.s32.totalorder %s1242_s11, %s1242_s11 }
   0x8   :  { %p1249_p3 = por %p1248_p2, %p1247_p1 }
   0xa   :  { %p1250_p4 = pnand %p1249_p3, %p1243_p0 }
   0xc   :  { %1253 = shalt.err (!%p1250_p4)  }
   0xd   :  { %s1692_s12 = smov [#allocation5]   ;;  %s1254_s13 = scalar_lea.vmem %s19_s10, 32 }
   0xe   :  { %17 = dma.vmem_to_smem %s15_s29, 32, %s1692_s12, [#allocation4] }
   0xf   :  { %p1255_p5 = scmp.ne.s32.totalorder %s19_s10, %s1254_s13  ;;  %p1259_p6 = scmp.lt.s32.totalorder %s19_s10, %s19_s10 }
  0x10   :  { %p1260_p7 = scmp.lt.s32.totalorder %s1254_s13, %s1254_s13 }
  0x12   :  { %p1261_p8 = por %p1260_p7, %p1259_p6 }
  0x14   :  { %p1262_p9 = pnand %p1261_p8, %p1255_p5 }
  0x16   :  { %1265 = shalt.err (!%p1262_p9)  }
  0x17   :  { %s1693_s0 = smov [#allocation6]   ;;  %s22_s15 = sshll.u32 %s2376_s2, 4  ;;  %s23_s15 = int_to_ptr.vmem [resolvable:$true] %s22_s15 }
  0x18   :  { %21 = dma.vmem_to_smem %s19_s10, 32, %s1693_s0, [#allocation4] }
  0x19   :  { %s1266_s16 = scalar_lea.vmem %s23_s15, 32  ;;  %p1271_p11 = scmp.lt.s32.totalorder %s23_s15, %s23_s15 }
  0x1a   :  { %p1267_p10 = scmp.ne.s32.totalorder %s23_s15, %s1266_s16  ;;  %p1272_p12 = scmp.lt.s32.totalorder %s1266_s16, %s1266_s16 }
  0x1c   :  { %p1273_p13 = por %p1272_p12, %p1271_p11 }
  0x1e   :  { %p1274_p0 = pnand %p1273_p13, %p1267_p10 }
  0x20   :  { %1277 = shalt.err (!%p1274_p0)  }
  0x21   :  { %s1694_s17 = smov [#allocation7]  }
  0x22   :  { %25 = dma.vmem_to_smem %s23_s15, 32, %s1694_s17, [#allocation4] }
  0x23   :  { %1626 = dma.done.wait [#allocation4], 96 }
  0x24   :  { %1627 = vsyncadd [#allocation4], 4294967200 }
  0x25   :  { %27 = sfence }
  0x26   :  { %28 = vsyncpa [#allocation9], 0 }
  0x27   :  { %30 = vsyncpa [#allocation9 + $0x1], 0 }
  0x28   :  { %31 = vsyncpa [#allocation12], 0 }
  0x29   :  { %33 = vsyncpa [#allocation12 + $0x1], 0 }
  0x2a   :  { %34 = vsyncpa [#allocation10], 0 }
  0x2b   :  { %36 = vsyncpa [#allocation10 + $0x1], 0 }
  0x2c   :  { %37 = vsyncpa [#allocation15], 0 }
  0x2d   :  { %39 = vsyncpa [#allocation15 + $0x1], 0  ;;  %s1770_s2 = smov 0   ;;  %s1772_s18 = smov 0  }
  0x2e   :  { %s1774_s19 = smov 0   ;;  %s1776_s20 = smov 0  }
  0x2f   :  { %s1778_s21 = smov 0   ;;  %s1780_s22 = smov 0  }
  0x30   :  { %s1782_s23 = smov 0   ;;  %s1784_s24 = smov 0  }
  0x31 LB: > { %2417 = sst [smem:[#allocation37_spill]] %s1662_s2  ;;  %s1034_s25 = sadd.s32 4294967295, %s1690_s24   ;;  %s1690_s24 = sphi %s1784_s24, %s45_s24   ;;  %s1686_s23 = sphi %s1782_s23, %s2485_s23   ;;  %s1682_s22 = sphi %s1780_s22, %s2484_s22   ;;  %s1678_s21 = sphi %s1778_s21, %s2483_s21   ;;  %s1674_s20 = sphi %s1776_s20, %s2482_s20   ;;  %s1670_s19 = sphi %s1774_s19, %s2481_s19   ;;  %s1666_s18 = sphi %s1772_s18, %s2480_s18   ;;  %s1662_s2 = sphi %s1770_s2, %s2479_s2  }
  0x32   : > { %2418 = sst [smem:[#allocation38_spill]] %s1666_s18  ;;  %s1035_s26 = sadd.s32 4294967294, %s1690_s24  }
  0x33   : > { %2419 = sst [smem:[#allocation39_spill]] %s1670_s19  ;;  %s54_s27 = sadd.s32 1, %s1682_s22 }
  0x34   : > { %2420 = sst [smem:[#allocation40_spill]] %s1674_s20  ;;  %s57_s28 = sadd.s32 1, %s1686_s23 }
  0x35   : > { %2421 = sst [smem:[#allocation41_spill]] %s1682_s22  ;;  %p55_p1 = scmp.ge.s32.totalorder %s54_s27, 2 }
  0x36   : > { %2422 = sst [smem:[#allocation42_spill]] %s1686_s23  ;;  %s94_s29 = sadd.s32 1, %s1670_s19 }
  0x37   : > { %2423 = sst [smem:[#allocation43_spill]] %s1690_s24  ;;  %p101_p2 = scmp.ne.s32.totalorder %s1670_s19, %s1666_s18 }
  0x38   : > { %p102_p3 = scmp.eq.s32.totalorder %s1690_s24, 0  ;;  %s2487_s27 = smov (%p55_p1, %s54_s27), 0 }
  0x39   : > { %2424 = sst [smem:[#allocation44_spill]] %s2487_s27  ;;  %s2489_s28 = smov (!%p55_p1, %s57_s28), %s1686_s23 }
  0x3a   : > { %s90_s30 = ssub.s32 %s1682_s22, %s2487_s27  ;;  %p1823_p4 = por %p102_p3, %p101_p2 }
  0x3b   : > { %p59_p5 = scmp.ge.s32.totalorder %s2489_s28, 2  ;;  %p107_p6 = scmp.ne.s32.totalorder %s1666_s18, %s1662_s2 }
  0x3c   : > { %p108_p7 = scmp.eq.s32.totalorder %s1034_s25, 0  ;;  %p161_p8 = scmp.eq.s32.totalorder %s1034_s25, 3 }
  0x3d   : > { %s2491_s28 = smov (%p59_p5, %s2489_s28), 0  ;;  %p167_p11 = scmp.eq.s32.totalorder %s1035_s26, 3 }
  0x3e   : > { %2426 = sst [smem:[#allocation45_spill]] %s2491_s28  ;;  %p1831_p9 = por %p108_p7, %p107_p6 }
  0x3f   : > { %p1835_p10 = por %p161_p8, %p101_p2  ;;  %s89_s12 = ssub.s32 %s1686_s23, %s2491_s28 }
  0x40   : > { %s91_s13 = sor.u32 %s90_s30, %s89_s12  ;;  %p1841_p13 = por %p167_p11, %p107_p6 }
  0x41   : > { %s2428_s11 = scalar_select %p1835_p10, 1, 0 }
  0x42   : > { %p92_p12 = scmp.eq.s32.totalorder %s91_s13, 0  ;;  %p1147_p0 = scmp.lt.s32.totalorder %s1690_s24, 4 }
  0x43   : > { %2429 = sst [smem:[#allocation46_spill]] %s2428_s11  ;;  %s1847_s1 = sand.u32 1, %s1670_s19  }
  0x44   : > { %s2430_s0 = scalar_select %p1841_p13, 1, 0 }
  0x45   : > { %s1850_s14 = scalar_select %p92_p12, %s1670_s19, %s94_s29  }
  0x46   : > { %2431 = sst [smem:[#allocation47_spill]] %s2430_s0  ;;  %s2379_s15 = sshll.u32 %s1847_s1, 4 }
  0x47   : > { %2432 = sst [smem:[#allocation48_spill]] %s1850_s14  ;;  %s1039_s16 = sshll.u32 %s1686_s23, 2 }
  0x48   : > { %s1855_s17 = sadd.s32 %s1682_s22, %s1039_s16  ;;  %s230_s25 = scalar_lea.vmem [#allocation8], %s2379_s15 }
  0x49   : > { %s238_s26 = sshll.u32 %s230_s25, 4  ;;  %s1040_s30 = sshll.u32 %s1855_s17, 7  ;;  %s239_s26 = int_to_ptr.vmem [resolvable:$true] %s238_s26 }
  0x4a   : > { %s2433_s4 = sld [smem:[#allocation56_spill]]  ;;  %p1865_p1 = pnand %p1147_p0, %p1823_p4 }
  0x4b   : > { %s227_s29 = scalar_lea.sflag [#allocation9], %s1847_s1  ;;  %s1291_s16 = scalar_lea.vmem %s239_s26, 256 }
  0x4c   : > { %p1280_p2 = pneg %p1865_p1  ;;  %p1292_p3 = scmp.ne.s32.totalorder %s239_s26, %s1291_s16 }
  0x4d   : > { %s1695_s17 = smov [#allocation8]  }
  0x4e   : > { %p1294_p5 = pnand %p1292_p3, %p1280_p2  ;;  %s1296_s25 = sshll.u32 %s1695_s17, 4  ;;  %s1297_s25 = int_to_ptr.vmem [resolvable:$false] %s1296_s25 }
  0x4f   : > { %s1298_s12 = scalar_lea.vmem %s1297_s25, 512  ;;  %p1299_p7 = scmp.lt.s32.totalorder %s239_s26, %s1297_s25 }
  0x50   : > { %s237_s28 = scalar_lea.hbm %s2433_s4, %s1040_s30  ;;  %p1295_p6 = pneg %p1294_p5 }
  0x51   : > { %p1300_p4 = scmp.lt.s32.totalorder %s1298_s12, %s1291_s16 }
  0x53   : > { %p1301_p8 = por %p1300_p4, %p1299_p7 }
  0x55   : > { %p1302_p11 = pnand %p1301_p8, %p1295_p6 }
  0x57   : > { %1305 = shalt.err (!%p1302_p11)
}
  0x58   : > { %s1696_s9 = smov 256   ;;  %s1697_s13 = smov 128  }
  0x59   : > { %s1698_s15 = smov 8   ;;  %p1044_p12 = scmp.ge.s32.totalorder %s1690_s24, 1 }
  0x5a   : > { %1136 = dma.hbm_to_vmem [thread:$0]  (!%p1865_p1), %s237_s28, 256, %s239_s26, %s227_s29, %s1696_s9, %s1697_s13, %s1698_s15  }
  0x5b   : > { %p268_p0 = scmp.lt.s32.totalorder %s1690_s24, 5  ;;  %s2436_s5 = sld [smem:[#allocation57_spill]] }
  0x5c   : > { %s2437_s4 = sshll.u32 %s1847_s1, 4  ;;  %s249_s14 = scalar_lea.sflag [#allocation12], %s1847_s1 }
  0x5d   : > { %p1880_p3 = pnand %p1044_p12, %p268_p0  ;;  %s252_s23 = scalar_lea.vmem [#allocation11], %s2437_s4 }
  0x5e   : > { %s260_s22 = sshll.u32 %s252_s23, 4  ;;  %s1699_s28 = smov [#allocation11]   ;;  %s261_s22 = int_to_ptr.vmem [resolvable:$true] %s260_s22 }
  0x5f   : > { %s1319_s19 = scalar_lea.vmem %s261_s22, 256  ;;  %s1324_s26 = sshll.u32 %s1699_s28, 4  ;;  %s1325_s26 = int_to_ptr.vmem [resolvable:$false] %s1324_s26 }
  0x60   : > { %p1320_p5 = scmp.ne.s32.totalorder %s261_s22, %s1319_s19  ;;  %s1326_s29 = scalar_lea.vmem %s1325_s26, 512 }
  0x61   : > { %s259_s12 = scalar_lea.hbm %s2436_s5, %s1040_s30  ;;  %p1327_p4 = scmp.lt.s32.totalorder %s261_s22, %s1325_s26 }
  0x62   : > { %p1322_p6 = pnand %p1320_p5, %p1280_p2  ;;  %p1328_p8 = scmp.lt.s32.totalorder %s1326_s29, %s1319_s19 }
  0x64   : > { %p1323_p7 = pneg %p1322_p6  ;;  %p1329_p11 = por %p1328_p8, %p1327_p4 }
  0x66   : > { %p1330_p12 = pnand %p1329_p11, %p1323_p7 }
  0x68   : > { %1333 = shalt.err (!%p1330_p12)
}
  0x69   : > { %1139 = dma.hbm_to_vmem [thread:$0]  (!%p1865_p1), %s259_s12, 256, %s261_s22, %s249_s14, %s1696_s9, %s1697_s13, %s1698_s15  }
  0x6a   : > { %272 = sbr.rel (%p1880_p3) target bundleno = 538 (0x21a), region = 32 }
  0x6f   : > { %s1899_s4 = sand.u32 1, %s1666_s18  }
  0x70   : > { %2438 = sst [smem:[#allocation49_spill]] %s1899_s4  ;;  %s1902_s23 = sshll.u32 %s1899_s4, 4 }
  0x71   : > { %s275_s19 = scalar_lea.sflag [#allocation9], %s1899_s4 }
  0x72   : > { %1629 = dma.done.wait (%p1831_p9), %s275_s19, 256  }
  0x73   : > { %1631 = vsyncadd (%p1831_p9), %s275_s19, 4294967040  ;;  %s284_s22 = scalar_lea.sflag [#allocation12], %s1899_s4 }
  0x74   : > { %1633 = dma.done.wait (%p1831_p9), %s284_s22, 256  }
  0x75   : > { %1635 = vsyncadd (%p1831_p9), %s284_s22, 4294967040  ;;  %s339_s14 = sshra.s32 %s1674_s20, 7  ;;  %s344_s15 = sand.u32 127, %s1674_s20  ;;  %v1700_v0 = vmov 0  }
  0x76   : > { %s341_s30 = sadd.s32 %s1678_s21, %s339_s14  ;;  %1241 = vset.pattern.permute.xlu0 %v1700_v0  ;;  %p330_p1 = scmp.lt.s32.totalorder %s1678_s21, 1 }
  0x77   : > { %s1052_s9 = sshll.u32 %s341_s30, 7  ;;  %p332_p2 = scmp.lt.s32.totalorder %s1674_s20, 1 }
  0x78   : > { %s345_s13 = sadd.s32 %s1052_s9, %s344_s15  ;;  %s1922_s10 = sshll.u32 %s1674_s20, 3 }
  0x79   : > { %s1924_s17 = sld [smem:[#allocation5 + %s345_s13]]  ;;  %s347_s16 = sshra.s32 %s1922_s10, 7 }
  0x7a   : > { %s331_s25 = scalar_select %p330_p1, %s1678_s21, 1 }
  0x7b   : > { %s333_s12 = scalar_select %p332_p2, %s1674_s20, 1 }
  0x7c   : > { %s1049_s28 = sshll.u32 %s331_s25, 1  ;;  %s349_s26 = sadd.s32 %s1678_s21, %s347_s16 }
  0x7d   : > { %s335_s29 = sadd.s32 %s1049_s28, %s333_s12  ;;  %s1053_s19 = sshll.u32 %s349_s26, 7 }
  0x7e   : > { %s1050_s22 = sshll.u32 %s335_s29, 3  ;;  %s352_s14 = sand.u32 127, %s1922_s10 }
  0x7f   : > { %s2439_s3 = sld [smem:[#allocation55_spill]]  ;;  %s353_s13 = sadd.s32 %s1053_s19, %s352_s14 }
  0x80   : > { %s1942_s16 = sld [smem:[#allocation6 + %s353_s13]]  ;;  %p1148_p11 = scmp.gt.s32.totalorder %s1924_s17, 0 }
  0x81   : > { %s418_s25 = sld [smem:[#allocation7 + %s353_s13]]  ;;  %s1701_s12 = smov [#allocation2]  }
  0x82   : > { %s436_s28 = sshll.u32 %s1701_s12, 4  ;;  %s355_s26 = sadd.s32 1, %s1922_s10  ;;  %s1945_s28 = int_to_ptr.vmem [resolvable:$true] %s436_s28 }
  0x83   : > { %s356_s29 = sshra.s32 %s355_s26, 7  ;;  %s361_s19 = sand.u32 127, %s355_s26 }
  0x84   : > { %s358_s14 = sadd.s32 %s1678_s21, %s356_s29 }
  0x85   : > { %s337_s9 = scalar_lea.vmem %s2439_s3, %s1050_s22  ;;  %s1054_s30 = sshll.u32 %s358_s14, 7 }
  0x86   : > { %v552_v1 = vld [vmem:[%s337_s9] sm:$0xff]  ;;  %2440 = sst [smem:[#allocation50_spill]] %s1942_s16  ;;  %s430_s22 = sadd.s32 %s1922_s10, %s1942_s16 }
  0x87   : > { %vm558_vm0 = vcmp.eq.s32.totalorder %v552_v1, 2  ;;  %vm557_vm1 = vcmp.eq.s32.totalorder %v552_v1, 1  ;;  %s1062_s15 = sshll.u32 %s418_s25, 5  ;;  %s362_s1 = sadd.s32 %s1054_s30, %s361_s19 }
  0x88   : > { %v559_v2 = vsel %vm558_vm0, 1, %v1700_v0  ;;  %v566_v3 = vsel %vm557_vm1, 1, %v1700_v0  ;;  %s432_s9 = sadd.s32 %s1062_s15, %s430_s22  ;;  %s1951_s13 = sld [smem:[#allocation6 + %s362_s1]] }
  0x89   : > { %561 = vperm.xlu0 %1241, %v559_v2   ;;  %s1063_s27 = sshll.u32 %s432_s9, 4  ;;  %s1956_s18 = sld [smem:[#allocation7 + %s362_s1]] }
  0x8a   : > { %s434_s5 = scalar_lea.hbm %s2372_s6, %s1063_s27  ;;  %s1963_s25 = scalar_lea.hbm %s2372_s6, 1024 }
  0x8b   : > { %s1334_s0 = scalar_lea.hbm %s434_s5, 32  ;;  %p1339_p8 = scmp.lt.s32.totalorder %s434_s5, %s2372_s6 }
  0x8c   : > { %p1335_p12 = scmp.ne.s32.totalorder %s434_s5, %s1334_s0  ;;  %p1340_p4 = scmp.lt.s32.totalorder %s1963_s25, %s1334_s0 }
  0x8d   : > { %568 = vperm.xlu0 %1241, %v566_v3  }
  0x8e   : > { %2441 = sst [smem:[#allocation51_spill]] %s1951_s13  ;;  %p1336_p1 = pnand %p1335_p12, %p1148_p11 }
  0x8f   : > { %p1341_p7 = por %p1340_p4, %p1339_p8 }
  0x90   : > { %p1337_p2 = pneg %p1336_p1 }
  0x92   : > { %p1342_p6 = pnand %p1341_p7, %p1337_p2 }
  0x94   : > { %1345 = shalt.err (!%p1342_p6)  }
  0x95   : > { %s1346_s3 = scalar_lea.vmem %s1945_s28, 32  ;;  %s1974_s1 = scalar_lea.vmem %s1945_s28, 256 }
  0x96   : > { %p1347_p12 = scmp.ne.s32.totalorder %s1945_s28, %s1346_s3  ;;  %p1353_p3 = scmp.lt.s32.totalorder %s1945_s28, %s1945_s28 }
  0x97   : > { %p1354_p0 = scmp.lt.s32.totalorder %s1974_s1, %s1346_s3 }
  0x98   : > { %p1348_p1 = pnand %p1347_p12, %p1148_p11 }
  0x99   : > { %p1355_p9 = por %p1354_p0, %p1353_p3 }
  0x9a   : > { %p1349_p5 = pneg %p1348_p1 }
  0x9c   : > { %p1356_p4 = pnand %p1355_p9, %p1349_p5 }
  0x9e   : > { %1359 = shalt.err (!%p1356_p4)  }
  0x9f   : > { %s2392_s0 = smov 256   ;;  %s2395_s27 = smov 16  }
  0xa0   : > { %s2397_s14 = smov 1   ;;  %p1149_p6 = scmp.gt.s32.totalorder %s1924_s17, 1 }
  0xa1   : > { %1114 = dma.hbm_to_vmem [thread:$0]  (%p1148_p11), %s434_s5, 32, %s1945_s28, [#allocation3], %s2392_s0, %s2395_s27, %s2397_s14 }
  0xa2   : > { %s1705_s15 = smov [#allocation2 + $0x2]   ;;  %s364_s9 = sadd.s32 2, %s1922_s10 }
  0xa3   : > { %s452_s30 = sshll.u32 %s1705_s15, 4  ;;  %s365_s12 = sshra.s32 %s364_s9, 7  ;;  %s1987_s30 = int_to_ptr.vmem [resolvable:$true] %s452_s30 }
  0xa4   : > { %s444_s26 = sadd.s32 %s1922_s10, %s1951_s13  ;;  %s367_s29 = sadd.s32 %s1678_s21, %s365_s12 }
  0xa5   : > { %s1065_s19 = sshll.u32 %s1956_s18, 5  ;;  %s1055_s22 = sshll.u32 %s367_s29, 7 }
  0xa6   : > { %s446_s3 = sadd.s32 %s1065_s19, %s444_s26  ;;  %s370_s2 = sand.u32 127, %s364_s9 }
  0xa7   : > { %s1066_s24 = sshll.u32 %s446_s3, 4  ;;  %s371_s8 = sadd.s32 %s1055_s22, %s370_s2 }
  0xa8   : > { %s448_s5 = scalar_lea.hbm %s2372_s6, %s1066_s24  ;;  %s1996_s0 = sld [smem:[#allocation6 + %s371_s8]] }
  0xa9   : > { %s1360_s15 = scalar_lea.hbm %s448_s5, 32  ;;  %p1365_p5 = scmp.lt.s32.totalorder %s448_s5, %s2372_s6 }
  0xaa   : > { %p1361_p9 = scmp.ne.s32.totalorder %s448_s5, %s1360_s15  ;;  %p1366_p7 = scmp.lt.s32.totalorder %s1963_s25, %s1360_s15 }
  0xac   : > { %p1362_p0 = pnand %p1361_p9, %p1149_p6  ;;  %p1367_p8 = por %p1366_p7, %p1365_p5 }
  0xae   : > { %2442 = sst [smem:[#allocation52_spill]] %s1996_s0  ;;  %p1363_p3 = pneg %p1362_p0 }
  0xb0   : > { %p1368_p11 = pnand %p1367_p8, %p1363_p3 }
  0xb2   : > { %1371 = shalt.err (!%p1368_p11)  }
  0xb3   : > { %s1372_s7 = scalar_lea.vmem %s1987_s30, 32  ;;  %p1379_p4 = scmp.lt.s32.totalorder %s1987_s30, %s1945_s28 }
  0xb4   : > { %p1373_p2 = scmp.ne.s32.totalorder %s1987_s30, %s1372_s7  ;;  %p1380_p9 = scmp.lt.s32.totalorder %s1974_s1, %s1372_s7 }
  0xb6   : > { %p1374_p12 = pnand %p1373_p2, %p1149_p6  ;;  %p1381_p0 = por %p1380_p9, %p1379_p4 }
  0xb8   : > { %p1375_p1 = pneg %p1374_p12 }
  0xba   : > { %p1382_p13 = pnand %p1381_p0, %p1375_p1 }
  0xbc   : > { %1385 = shalt.err (!%p1382_p13)  }
  0xbd   : > { %s2443_s2 = smov 1   ;;  %s2444_s18 = smov 16  }
  0xbe   : > { %s2445_s24 = smov 256   ;;  %s420_s11 = sld [smem:[#allocation7 + %s371_s8]] }
  0xbf   : > { %1116 = dma.hbm_to_vmem [thread:$0]  (%p1149_p6), %s448_s5, 32, %s1987_s30, [#allocation3 + $0x1], %s2445_s24, %s2444_s18, %s2443_s2 }
  0xc0   : > { %s373_s27 = sadd.s32 3, %s1922_s10  ;;  %s1706_s14 = smov [#allocation2 + $0x4]  }
  0xc1   : > { %s468_s9 = sshll.u32 %s1706_s14, 4  ;;  %s374_s12 = sshra.s32 %s373_s27, 7  ;;  %s2022_s9 = int_to_ptr.vmem [resolvable:$true] %s468_s9 }
  0xc2   : > { %p1150_p3 = scmp.gt.s32.totalorder %s1924_s17, 2  ;;  %s376_s26 = sadd.s32 %s1678_s21, %s374_s12 }
  0xc3   : > { %s460_s29 = sadd.s32 %s1922_s10, %s1996_s0  ;;  %s1056_s19 = sshll.u32 %s376_s26, 7 }
  0xc4   : > { %s379_s22 = sand.u32 127, %s373_s27  ;;  %s1068_s3 = sshll.u32 %s420_s11, 5 }
  0xc5   : > { %s380_s15 = sadd.s32 %s1056_s19, %s379_s22  ;;  %s462_s7 = sadd.s32 %s1068_s3, %s460_s29 }
  0xc6   : > { %s2024_s4 = sld [smem:[#allocation6 + %s380_s15]]  ;;  %s1069_s30 = sshll.u32 %s462_s7, 4 }
  0xc7   : > { %s2026_s8 = sld [smem:[#allocation7 + %s380_s15]]  ;;  %s464_s20 = scalar_lea.hbm %s2372_s6, %s1069_s30 }
  0xc8   : > { %s1386_s13 = scalar_lea.hbm %s464_s20, 32  ;;  %p1391_p7 = scmp.lt.s32.totalorder %s464_s20, %s2372_s6 }
  0xc9   : > { %p1387_p13 = scmp.ne.s32.totalorder %s464_s20, %s1386_s13  ;;  %p1392_p8 = scmp.lt.s32.totalorder %s1963_s25, %s1386_s13 }
  0xcb   : > { %p1388_p6 = pnand %p1387_p13, %p1150_p3  ;;  %p1393_p11 = por %p1392_p8, %p1391_p7 }
  0xcc   : > { %2446 = sst [smem:[#allocation53_spill]] %s2024_s4 }
  0xcd   : > { %p1389_p5 = pneg %p1388_p6 }
  0xcf   : > { %p1394_p2 = pnand %p1393_p11, %p1389_p5 }
  0xd1   : > { %1397 = shalt.err (!%p1394_p2)  }
  0xd2   : > { %s1398_s11 = scalar_lea.vmem %s2022_s9, 32  ;;  %p1405_p9 = scmp.lt.s32.totalorder %s2022_s9, %s1945_s28 }
  0xd3   : > { %p1399_p12 = scmp.ne.s32.totalorder %s2022_s9, %s1398_s11  ;;  %p1406_p0 = scmp.lt.s32.totalorder %s1974_s1, %s1398_s11 }
  0xd5   : > { %p1400_p1 = pnand %p1399_p12, %p1150_p3  ;;  %p1407_p13 = por %p1406_p0, %p1405_p9 }
  0xd7   : > { %p1401_p4 = pneg %p1400_p1 }
  0xd9   : > { %p1408_p6 = pnand %p1407_p13, %p1401_p4 }
  0xdb   : > { %1411 = shalt.err (!%p1408_p6)  }
  0xdc   : > { %1118 = dma.hbm_to_vmem [thread:$0]  (%p1150_p3), %s464_s20, 32, %s2022_s9, [#allocation3 + $0x2], %s2445_s24, %s2444_s18, %s2443_s2 }
  0xdd   : > { %s1707_s13 = smov [#allocation2 + $0x6]   ;;  %p1151_p5 = scmp.gt.s32.totalorder %s1924_s17, 3 }
  0xde   : > { %s484_s27 = sshll.u32 %s1707_s13, 4  ;;  %s476_s29 = sadd.s32 %s1922_s10, %s2024_s4  ;;  %s2051_s27 = int_to_ptr.vmem [resolvable:$true] %s484_s27 }
  0xdf   : > { %s382_s19 = sadd.s32 4, %s1922_s10  ;;  %s1071_s22 = sshll.u32 %s2026_s8, 5 }
  0xe0   : > { %s383_s3 = sshra.s32 %s382_s19, 7  ;;  %s478_s15 = sadd.s32 %s1071_s22, %s476_s29 }
  0xe1   : > { %s385_s7 = sadd.s32 %s1678_s21, %s383_s3  ;;  %s1072_s30 = sshll.u32 %s478_s15, 4 }
  0xe2   : > { %s1057_s5 = sshll.u32 %s385_s7, 7  ;;  %s480_s26 = scalar_lea.hbm %s2372_s6, %s1072_s30 }
  0xe3   : > { %s388_s20 = sand.u32 127, %s382_s19  ;;  %s1412_s9 = scalar_lea.hbm %s480_s26, 32 }
  0xe4   : > { %p1413_p3 = scmp.ne.s32.totalorder %s480_s26, %s1412_s9  ;;  %p1417_p11 = scmp.lt.s32.totalorder %s480_s26, %s2372_s6 }
  0xe5   : > { %p1418_p2 = scmp.lt.s32.totalorder %s1963_s25, %s1412_s9 }
  0xe6   : > { %p1414_p7 = pnand %p1413_p3, %p1151_p5 }
  0xe7   : > { %p1419_p12 = por %p1418_p2, %p1417_p11 }
  0xe8   : > { %p1415_p8 = pneg %p1414_p7 }
  0xea   : > { %p1420_p1 = pnand %p1419_p12, %p1415_p8 }
  0xec   : > { %1423 = shalt.err (!%p1420_p1)  }
  0xed   : > { %s1424_s8 = scalar_lea.vmem %s2051_s27, 32  ;;  %p1431_p13 = scmp.lt.s32.totalorder %s2051_s27, %s1945_s28 }
  0xee   : > { %p1425_p4 = scmp.ne.s32.totalorder %s2051_s27, %s1424_s8  ;;  %p1432_p6 = scmp.lt.s32.totalorder %s1974_s1, %s1424_s8 }
  0xf0   : > { %p1426_p9 = pnand %p1425_p4, %p1151_p5  ;;  %p1433_p3 = por %p1432_p6, %p1431_p13 }
  0xf2   : > { %p1427_p0 = pneg %p1426_p9 }
  0xf4   : > { %p1434_p7 = pnand %p1433_p3, %p1427_p0 }
  0xf6   : > { %1437 = shalt.err (!%p1434_p7)  }
  0xf7   : > { %1120 = dma.hbm_to_vmem [thread:$0]  (%p1151_p5), %s480_s26, 32, %s2051_s27, [#allocation3 + $0x3], %s2445_s24, %s2444_s18, %s2443_s2 }
  0xf8   : > { %s389_s29 = sadd.s32 %s1057_s5, %s388_s20  ;;  %s1708_s3 = smov [#allocation2 + $0x8]  }
  0xf9   : > { %s2080_s19 = sld [smem:[#allocation6 + %s389_s29]]  ;;  %s500_s15 = sshll.u32 %s1708_s3, 4  ;;  %s2084_s15 = int_to_ptr.vmem [resolvable:$true] %s500_s15 }
  0xfa   : > { %s422_s22 = sld [smem:[#allocation7 + %s389_s29]]  ;;  %p1152_p8 = scmp.gt.s32.totalorder %s1924_s17, 4 }
  0xfb   : > { %s391_s7 = sadd.s32 5, %s1922_s10  ;;  %s1709_s29 = smov [#allocation2 + $0xa]  }
  0xfc   : > { %s392_s30 = sshra.s32 %s391_s7, 7  ;;  %s397_s14 = sand.u32 127, %s391_s7 }
  0xfd   : > { %s394_s12 = sadd.s32 %s1678_s21, %s392_s30  ;;  %s516_s3 = sshll.u32 %s1709_s29, 4  ;;  %s2116_s3 = int_to_ptr.vmem [resolvable:$true] %s516_s3 }
  0xfe   : > { %s1058_s9 = sshll.u32 %s394_s12, 7 }
  0xff   : > { %s492_s11 = sadd.s32 %s1922_s10, %s2080_s19  ;;  %s398_s27 = sadd.s32 %s1058_s9, %s397_s14 }
 0x100   : > { %s1074_s5 = sshll.u32 %s422_s22, 5  ;;  %s2089_s26 = sld [smem:[#allocation6 + %s398_s27]] }
 0x101   : > { %s494_s20 = sadd.s32 %s1074_s5, %s492_s11  ;;  %s2091_s13 = sld [smem:[#allocation7 + %s398_s27]] }
 0x102   : > { %s1075_s8 = sshll.u32 %s494_s20, 4 }
 0x103   : > { %s496_s7 = scalar_lea.hbm %s2372_s6, %s1075_s8 }
 0x104   : > { %s1438_s16 = scalar_lea.hbm %s496_s7, 32  ;;  %p1443_p1 = scmp.lt.s32.totalorder %s496_s7, %s2372_s6 }
 0x105   : > { %p1439_p11 = scmp.ne.s32.totalorder %s496_s7, %s1438_s16  ;;  %p1444_p4 = scmp.lt.s32.totalorder %s1963_s25, %s1438_s16 }
 0x106   : > { %2447 = sst [smem:[#allocation54_spill]] %s2089_s26 }
 0x107   : > { %p1440_p2 = pnand %p1439_p11, %p1152_p8  ;;  %p1445_p9 = por %p1444_p4, %p1443_p1 }
 0x109   : > { %p1441_p12 = pneg %p1440_p2 }
 0x10b   : > { %p1446_p0 = pnand %p1445_p9, %p1441_p12 }
 0x10d   : > { %1449 = shalt.err (!%p1446_p0)  }
 0x10e   : > { %s1450_s4 = scalar_lea.vmem %s2084_s15, 32  ;;  %p1457_p7 = scmp.lt.s32.totalorder %s2084_s15, %s1945_s28 }
 0x10f   : > { %p1451_p13 = scmp.ne.s32.totalorder %s2084_s15, %s1450_s4  ;;  %p1458_p11 = scmp.lt.s32.totalorder %s1974_s1, %s1450_s4 }
 0x111   : > { %p1452_p6 = pnand %p1451_p13, %p1152_p8  ;;  %p1459_p2 = por %p1458_p11, %p1457_p7 }
 0x113   : > { %p1453_p3 = pneg %p1452_p6 }
 0x115   : > { %p1460_p5 = pnand %p1459_p2, %p1453_p3 }
 0x117   : > { %1463 = shalt.err (!%p1460_p5)  }
 0x118   : > { %1122 = dma.hbm_to_vmem [thread:$0]  (%p1152_p8), %s496_s7, 32, %s2084_s15, [#allocation3 + $0x4], %s2445_s24, %s2444_s18, %s2443_s2 }
 0x119   : > { %s400_s16 = sadd.s32 6, %s1922_s10  ;;  %s508_s0 = sadd.s32 %s1922_s10, %s2089_s26 }
 0x11a   : > { %s401_s14 = sshra.s32 %s400_s16, 7  ;;  %s1077_s12 = sshll.u32 %s2091_s13, 5 }
 0x11b   : > { %s403_s9 = sadd.s32 %s1678_s21, %s401_s14  ;;  %s510_s11 = sadd.s32 %s1077_s12, %s508_s0 }
 0x11c   : > { %s1059_s27 = sshll.u32 %s403_s9, 7  ;;  %s1078_s5 = sshll.u32 %s510_s11, 4 }
 0x11d   : > { %s406_s20 = sand.u32 127, %s400_s16  ;;  %s512_s30 = scalar_lea.hbm %s2372_s6, %s1078_s5 }
 0x11e   : > { %s407_s22 = sadd.s32 %s1059_s27, %s406_s20  ;;  %s1464_s4 = scalar_lea.hbm %s512_s30, 32 }
 0x11f   : > { %p1465_p5 = scmp.ne.s32.totalorder %s512_s30, %s1464_s4  ;;  %p2448_p8 = scmp.gt.s32.totalorder %s1924_s17, 5 }
 0x120   : > { %p1469_p4 = scmp.lt.s32.totalorder %s512_s30, %s2372_s6  ;;  %p1470_p9 = scmp.lt.s32.totalorder %s1963_s25, %s1464_s4 }
 0x121   : > { %p1466_p12 = pnand %p1465_p5, %p2448_p8 }
 0x122   : > { %p1471_p0 = por %p1470_p9, %p1469_p4 }
 0x123   : > { %p1467_p1 = pneg %p1466_p12 }
 0x125   : > { %p1472_p13 = pnand %p1471_p0, %p1467_p1 }
 0x127   : > { %1475 = shalt.err (!%p1472_p13)  }
 0x128   : > { %s1476_s13 = scalar_lea.vmem %s2116_s3, 32  ;;  %p2449_p3 = pmov %p2448_p8 }
 0x129   : > { %p1477_p6 = scmp.ne.s32.totalorder %s2116_s3, %s1476_s13  ;;  %p1483_p2 = scmp.lt.s32.totalorder %s2116_s3, %s1945_s28 }
 0x12a   : > { %p1484_p5 = scmp.lt.s32.totalorder %s1974_s1, %s1476_s13 }
 0x12b   : > { %p1478_p7 = pnand %p1477_p6, %p2449_p3 }
 0x12c   : > { %p1485_p8 = por %p1484_p5, %p1483_p2 }
 0x12d   : > { %p1479_p11 = pneg %p1478_p7 }
 0x12f   : > { %p1486_p12 = pnand %p1485_p8, %p1479_p11 }
 0x131   : > { %1489 = shalt.err (!%p1486_p12)  }
 0x132   : > { %p2450_p4 = pmov %p2449_p3  ;;  %s2145_s16 = sld [smem:[#allocation6 + %s407_s22]] }
 0x133   : > { %s424_s0 = sld [smem:[#allocation7 + %s407_s22]]  ;;  %s1710_s14 = smov [#allocation2 + $0xc]  }
 0x134   : > { %1124 = dma.hbm_to_vmem [thread:$0]  (%p2450_p4), %s512_s30, 32, %s2116_s3, [#allocation3 + $0x5], %s2445_s24, %s2444_s18, %s2443_s2 }
 0x135   : > { %s532_s12 = sshll.u32 %s1710_s14, 4  ;;  %s409_s9 = sadd.s32 7, %s1922_s10  ;;  %s2150_s12 = int_to_ptr.vmem [resolvable:$true] %s532_s12 }
 0x136   : > { %s410_s11 = sshra.s32 %s409_s9, 7  ;;  %s415_s27 = sand.u32 127, %s409_s9 }
 0x137   : > { %p1154_p1 = scmp.gt.s32.totalorder %s1924_s17, 6  ;;  %s412_s5 = sadd.s32 %s1678_s21, %s410_s11 }
 0x138   : > { %s1060_s20 = sshll.u32 %s412_s5, 7  ;;  %s524_s8 = sadd.s32 %s1922_s10, %s2145_s16 }
 0x139   : > { %s416_s29 = sadd.s32 %s1060_s20, %s415_s27  ;;  %s1080_s4 = sshll.u32 %s424_s0, 5 }
 0x13a   : > { %s2154_s3 = sld [smem:[#allocation6 + %s416_s29]]  ;;  %s526_s30 = sadd.s32 %s1080_s4, %s524_s8 }
 0x13b   : > { %s425_s15 = sld [smem:[#allocation7 + %s416_s29]]  ;;  %s1081_s22 = sshll.u32 %s526_s30, 4 }
 0x13c   : > { %s528_s14 = scalar_lea.hbm %s2372_s6, %s1081_s22 }
 0x13d   : > { %s1490_s26 = scalar_lea.hbm %s528_s14, 32  ;;  %p1495_p6 = scmp.lt.s32.totalorder %s528_s14, %s2372_s6 }
 0x13e   : > { %p1491_p9 = scmp.ne.s32.totalorder %s528_s14, %s1490_s26  ;;  %p1496_p3 = scmp.lt.s32.totalorder %s1963_s25, %s1490_s26 }
 0x140   : > { %p1492_p0 = pnand %p1491_p9, %p1154_p1  ;;  %p1497_p7 = por %p1496_p3, %p1495_p6 }
 0x142   : > { %p1493_p13 = pneg %p1492_p0 }
 0x144   : > { %p1498_p11 = pnand %p1497_p7, %p1493_p13 }
 0x146   : > { %1501 = shalt.err (!%p1498_p11)  }
 0x147   : > { %s1502_s0 = scalar_lea.vmem %s2150_s12, 32  ;;  %p1509_p12 = scmp.lt.s32.totalorder %s2150_s12, %s1945_s28 }
 0x148   : > { %p1503_p2 = scmp.ne.s32.totalorder %s2150_s12, %s1502_s0  ;;  %p1510_p4 = scmp.lt.s32.totalorder %s1974_s1, %s1502_s0 }
 0x14a   : > { %p1504_p5 = pnand %p1503_p2, %p1154_p1  ;;  %p1511_p9 = por %p1510_p4, %p1509_p12 }
 0x14c   : > { %p1505_p8 = pneg %p1504_p5 }
 0x14e   : > { %p1512_p0 = pnand %p1511_p9, %p1505_p8 }
 0x150   : > { %1515 = shalt.err (!%p1512_p0)  }
 0x151   : > { %1126 = dma.hbm_to_vmem [thread:$0]  (%p1154_p1), %s528_s14, 32, %s2150_s12, [#allocation3 + $0x6], %s2445_s24, %s2444_s18, %s2443_s2 }
 0x152   : > { %s1711_s26 = smov [#allocation2 + $0xe]   ;;  %s540_s5 = sadd.s32 %s1922_s10, %s2154_s3 }
 0x153   : > { %s548_s27 = sshll.u32 %s1711_s26, 4  ;;  %p1155_p13 = scmp.gt.s32.totalorder %s1924_s17, 7  ;;  %s549_s27 = int_to_ptr.vmem [resolvable:$true] %s548_s27 }
 0x154   : > { %s1083_s20 = sshll.u32 %s425_s15, 5 }
 0x155   : > { %s542_s8 = sadd.s32 %s1083_s20, %s540_s5 }
 0x156   : > { %s1084_s29 = sshll.u32 %s542_s8, 4 }
 0x157   : > { %s544_s22 = scalar_lea.hbm %s2372_s6, %s1084_s29 }
 0x158   : > { %s1516_s7 = scalar_lea.hbm %s544_s22, 32  ;;  %p1521_p1 = scmp.lt.s32.totalorder %s544_s22, %s2372_s6 }
 0x159   : > { %p1517_p6 = scmp.ne.s32.totalorder %s544_s22, %s1516_s7  ;;  %p1522_p11 = scmp.lt.s32.totalorder %s1963_s25, %s1516_s7 }
 0x15b   : > { %p1518_p3 = pnand %p1517_p6, %p1155_p13  ;;  %p1523_p2 = por %p1522_p11, %p1521_p1 }
 0x15d   : > { %p1519_p7 = pneg %p1518_p3 }
 0x15f   : > { %p1524_p5 = pnand %p1523_p2, %p1519_p7 }
 0x161   : > { %1527 = shalt.err (!%p1524_p5)  }
 0x162   : > { %s1528_s10 = scalar_lea.vmem %s549_s27, 32  ;;  %p1535_p9 = scmp.lt.s32.totalorder %s549_s27, %s1945_s28 }
 0x163   : > { %p1529_p8 = scmp.ne.s32.totalorder %s549_s27, %s1528_s10  ;;  %p1536_p0 = scmp.lt.s32.totalorder %s1974_s1, %s1528_s10 }
 0x165   : > { %p1530_p12 = pnand %p1529_p8, %p1155_p13  ;;  %p1537_p6 = por %p1536_p0, %p1535_p9 }
 0x167   : > { %p1531_p4 = pneg %p1530_p12 }
 0x169   : > { %p1538_p3 = pnand %p1537_p6, %p1531_p4 }
 0x16b   : > { %1541 = shalt.err (!%p1538_p3)  }
 0x16c   : > { %1128 = dma.hbm_to_vmem [thread:$0]  (%p1155_p13), %s544_s22, 32, %s549_s27, [#allocation3 + $0x7], %s2445_s24, %s2444_s18, %s2443_s2  ;;  %v562_v6 = vpop.permute.xlu0 %561 }
 0x16d   : > { %s2451_s25 = scalar_lea.vmem [#allocation11], %s1902_s23  ;;  %vm563_vm2 = vcmp.eq.s32.totalorder %v562_v6, 1  ;;  %s2453_s28 = scalar_lea.vmem [#allocation8], %s1902_s23 }
 0x16e   : > { %v555_v4 = vld [vmem:[%s2451_s25] sm:$0xff]  ;;  %s2452_s12 = smov %s2451_s25  ;;  %s2454_s1 = smov %s2453_s28 }
 0x16f   : > { %v556_v5 = vld [vmem:[%s2452_s12 + $0x8] sm:$0xff]  ;;  %v553_v7 = vld [vmem:[%s2453_s28] sm:$0xff]  ;;  %v575_v9 = vsel %vm563_vm2, 0.0, %v555_v4  ;;  %s2208_s15 = scalar_lea.vmem [#allocation14], %s1902_s23  ;;  %s2213_s2 = scalar_lea.vmem [#allocation13], %s1902_s23 }
 0x170   : > { %v554_v8 = vld [vmem:[%s2454_s1 + $0x8] sm:$0xff]  ;;  %v576_v10 = vsel %vm563_vm2, 0.0, %v556_v5  ;;  %577 = vst [vmem:[%s2208_s15] sm:$0xff] %v575_v9  ;;  %v569_v11 = vpop.permute.xlu0 %568  ;;  %v564_v12 = vsel %vm563_vm2, 0.0, %v553_v7  ;;  %p2455_p13 = scmp.le.s32.totalorder %s1924_s17, 0 }
 0x171   : > { %578 = vst [vmem:[%s2208_s15 + $0x8] sm:$0xff] %v576_v10  ;;  %v565_v13 = vsel %vm563_vm2, 0.0, %v554_v8  ;;  %vm570_vm3 = vcmp.eq.s32.totalorder %v569_v11, 1 }
 0x172   : > { %v571_v14 = vsel %vm570_vm3, %v555_v4, %v564_v12  ;;  %v572_v15 = vsel %vm570_vm3, %v556_v5, %v565_v13  ;;  %581 = sbr.rel (%p2455_p13) target bundleno = 385 (0x181), region = 76 }
 0x173   : > { %573 = vst [vmem:[%s2213_s2] sm:$0xff] %v571_v14  ;;  %574 = vst [vmem:[%s2213_s2 + $0x8] sm:$0xff] %v572_v15 }
 0x177   : > { %1636 = dma.done.wait [#allocation3], 32 }
 0x178   : > { %1637 = vsyncadd [#allocation3], 4294967264  ;;  %s2456_s18 = sld [smem:[#allocation50_spill]]  ;;  %v586_v16 = vld [vmem:[#allocation2] sm:$0x1] }
 0x179   : > { %v587_v17 = vld [vmem:[#allocation2 + $0x1] sm:$0x1] }
 0x17e   : > { %s588_s24 = scalar_lea.vmem %s2213_s2, %s2456_s18 [#allocation13]  ;;  %s591_s14 = scalar_lea.vmem %s2208_s15, %s2456_s18 [#allocation14] }
 0x17f   : > { %589 = vst [vmem:[%s588_s24] sm:$0x1] %v586_v16  ;;  %590 = vst [vmem:[%s588_s24 + $0x8] sm:$0x1] %v587_v17 }
 0x180   : > { %592 = vst [vmem:[%s591_s14] sm:$0x1] %v586_v16  ;;  %593 = vst [vmem:[%s591_s14 + $0x8] sm:$0x1] %v587_v17 }
 0x181 PF: > { %p2457_p7 = scmp.le.s32.totalorder %s1924_s17, 1 }
 0x183   : > { %596 = sbr.rel (%p2457_p7) target bundleno = 402 (0x192), region = 80 }
 0x188   : > { %1638 = dma.done.wait [#allocation3 + $0x1], 32 }
 0x189   : > { %1639 = vsyncadd [#allocation3 + $0x1], 4294967264  ;;  %s2458_s23 = sld [smem:[#allocation51_spill]]  ;;  %v603_v18 = vld [vmem:[#allocation2 + $0x2] sm:$0x1] }
 0x18a   : > { %v604_v19 = vld [vmem:[#allocation2 + $0x3] sm:$0x1] }
 0x18f   : > { %s605_s11 = scalar_lea.vmem %s2213_s2, %s2458_s23 [#allocation13]  ;;  %s608_s0 = scalar_lea.vmem %s2208_s15, %s2458_s23 [#allocation14] }
 0x190   : > { %606 = vst [vmem:[%s605_s11] sm:$0x1] %v603_v18  ;;  %607 = vst [vmem:[%s605_s11 + $0x8] sm:$0x1] %v604_v19 }
 0x191   : > { %609 = vst [vmem:[%s608_s0] sm:$0x1] %v603_v18  ;;  %610 = vst [vmem:[%s608_s0 + $0x8] sm:$0x1] %v604_v19 }
 0x192 PF: > { %p2459_p1 = scmp.le.s32.totalorder %s1924_s17, 2 }
 0x194   : > { %613 = sbr.rel (%p2459_p1) target bundleno = 419 (0x1a3), region = 84 }
 0x199   : > { %1640 = dma.done.wait [#allocation3 + $0x2], 32 }
 0x19a   : > { %1641 = vsyncadd [#allocation3 + $0x2], 4294967264  ;;  %s2460_s26 = sld [smem:[#allocation52_spill]]  ;;  %v620_v20 = vld [vmem:[#allocation2 + $0x4] sm:$0x1] }
 0x19b   : > { %v621_v21 = vld [vmem:[#allocation2 + $0x5] sm:$0x1] }
 0x1a0   : > { %s622_s27 = scalar_lea.vmem %s2213_s2, %s2460_s26 [#allocation13]  ;;  %s625_s5 = scalar_lea.vmem %s2208_s15, %s2460_s26 [#allocation14] }
 0x1a1   : > { %623 = vst [vmem:[%s622_s27] sm:$0x1] %v620_v20  ;;  %624 = vst [vmem:[%s622_s27 + $0x8] sm:$0x1] %v621_v21 }
 0x1a2   : > { %626 = vst [vmem:[%s625_s5] sm:$0x1] %v620_v20  ;;  %627 = vst [vmem:[%s625_s5 + $0x8] sm:$0x1] %v621_v21 }
 0x1a3 PF: > { %p2461_p11 = scmp.le.s32.totalorder %s1924_s17, 3 }
 0x1a5   : > { %630 = sbr.rel (%p2461_p11) target bundleno = 436 (0x1b4), region = 88 }
 0x1aa   : > { %1642 = dma.done.wait [#allocation3 + $0x3], 32 }
 0x1ab   : > { %1643 = vsyncadd [#allocation3 + $0x3], 4294967264  ;;  %s2462_s20 = sld [smem:[#allocation53_spill]]  ;;  %v637_v22 = vld [vmem:[#allocation2 + $0x6] sm:$0x1] }
 0x1ac   : > { %v638_v23 = vld [vmem:[#allocation2 + $0x7] sm:$0x1] }
 0x1b1   : > { %s639_s8 = scalar_lea.vmem %s2213_s2, %s2462_s20 [#allocation13]  ;;  %s642_s29 = scalar_lea.vmem %s2208_s15, %s2462_s20 [#allocation14] }
 0x1b2   : > { %640 = vst [vmem:[%s639_s8] sm:$0x1] %v637_v22  ;;  %641 = vst [vmem:[%s639_s8 + $0x8] sm:$0x1] %v638_v23 }
 0x1b3   : > { %643 = vst [vmem:[%s642_s29] sm:$0x1] %v637_v22  ;;  %644 = vst [vmem:[%s642_s29 + $0x8] sm:$0x1] %v638_v23 }
 0x1b4 PF: > { %p2463_p2 = scmp.le.s32.totalorder %s1924_s17, 4 }
 0x1b6   : > { %647 = sbr.rel (%p2463_p2) target bundleno = 447 (0x1bf), region = 92 }
 0x1bb   : > { %1644 = dma.done.wait [#allocation3 + $0x4], 32 }
 0x1bc   : > { %1645 = vsyncadd [#allocation3 + $0x4], 4294967264  ;;  %s656_s4 = scalar_lea.vmem %s2213_s2, %s2080_s19 [#allocation13]  ;;  %s659_s30 = scalar_lea.vmem %s2208_s15, %s2080_s19 [#allocation14]  ;;  %v654_v24 = vld [vmem:[#allocation2 + $0x8] sm:$0x1]  ;;  %v655_v25 = vld [vmem:[#allocation2 + $0x9] sm:$0x1] }
 0x1bd   : > { %657 = vst [vmem:[%s656_s4] sm:$0x1] %v654_v24  ;;  %658 = vst [vmem:[%s656_s4 + $0x8] sm:$0x1] %v655_v25 }
 0x1be   : > { %660 = vst [vmem:[%s659_s30] sm:$0x1] %v654_v24  ;;  %661 = vst [vmem:[%s659_s30 + $0x8] sm:$0x1] %v655_v25 }
 0x1bf PF: > { %p2464_p5 = scmp.le.s32.totalorder %s1924_s17, 5 }
 0x1c1   : > { %664 = sbr.rel (%p2464_p5) target bundleno = 464 (0x1d0), region = 96 }
 0x1c6   : > { %1646 = dma.done.wait [#allocation3 + $0x5], 32 }
 0x1c7   : > { %1647 = vsyncadd [#allocation3 + $0x5], 4294967264  ;;  %s2465_s22 = sld [smem:[#allocation54_spill]]  ;;  %v671_v26 = vld [vmem:[#allocation2 + $0xa] sm:$0x1] }
 0x1c8   : > { %v672_v27 = vld [vmem:[#allocation2 + $0xb] sm:$0x1] }
 0x1cd   : > { %s673_s7 = scalar_lea.vmem %s2213_s2, %s2465_s22 [#allocation13]  ;;  %s676_s13 = scalar_lea.vmem %s2208_s15, %s2465_s22 [#allocation14] }
 0x1ce   : > { %674 = vst [vmem:[%s673_s7] sm:$0x1] %v671_v26  ;;  %675 = vst [vmem:[%s673_s7 + $0x8] sm:$0x1] %v672_v27 }
 0x1cf   : > { %677 = vst [vmem:[%s676_s13] sm:$0x1] %v671_v26  ;;  %678 = vst [vmem:[%s676_s13 + $0x8] sm:$0x1] %v672_v27 }
 0x1d0 PF: > { %p2466_p8 = scmp.le.s32.totalorder %s1924_s17, 6 }
 0x1d2   : > { %681 = sbr.rel (%p2466_p8) target bundleno = 475 (0x1db), region = 100 }
 0x1d7   : > { %1648 = dma.done.wait [#allocation3 + $0x6], 32 }
 0x1d8   : > { %1649 = vsyncadd [#allocation3 + $0x6], 4294967264  ;;  %s690_s19 = scalar_lea.vmem %s2213_s2, %s2145_s16 [#allocation13]  ;;  %s693_s9 = scalar_lea.vmem %s2208_s15, %s2145_s16 [#allocation14]  ;;  %v688_v28 = vld [vmem:[#allocation2 + $0xc] sm:$0x1]  ;;  %v689_v29 = vld [vmem:[#allocation2 + $0xd] sm:$0x1] }
 0x1d9   : > { %691 = vst [vmem:[%s690_s19] sm:$0x1] %v688_v28  ;;  %692 = vst [vmem:[%s690_s19 + $0x8] sm:$0x1] %v689_v29 }
 0x1da   : > { %694 = vst [vmem:[%s693_s9] sm:$0x1] %v688_v28  ;;  %695 = vst [vmem:[%s693_s9 + $0x8] sm:$0x1] %v689_v29 }
 0x1db PF: > { %p2467_p12 = scmp.le.s32.totalorder %s1924_s17, 7 }
 0x1dd   : > { %698 = sbr.rel (%p2467_p12) target bundleno = 486 (0x1e6), region = 104 }
 0x1e2   : > { %1650 = dma.done.wait [#allocation3 + $0x7], 32 }
 0x1e3   : > { %1651 = vsyncadd [#allocation3 + $0x7], 4294967264  ;;  %s707_s10 = scalar_lea.vmem %s2213_s2, %s2154_s3 [#allocation13]  ;;  %s710_s25 = scalar_lea.vmem %s2208_s15, %s2154_s3 [#allocation14]  ;;  %v705_v30 = vld [vmem:[#allocation2 + $0xe] sm:$0x1]  ;;  %v706_v31 = vld [vmem:[#allocation2 + $0xf] sm:$0x1] }
 0x1e4   : > { %708 = vst [vmem:[%s707_s10] sm:$0x1] %v705_v30  ;;  %709 = vst [vmem:[%s707_s10 + $0x8] sm:$0x1] %v706_v31 }
 0x1e5   : > { %711 = vst [vmem:[%s710_s25] sm:$0x1] %v705_v30  ;;  %712 = vst [vmem:[%s710_s25 + $0x8] sm:$0x1] %v706_v31 }
 0x1e6 PF: > { %s2468_s16 = sld [smem:[#allocation40_spill]]  ;;  %s1095_s28 = sshll.u32 %s1678_s21, 2 }
 0x1e7   : > { %s2469_s17 = sld [smem:[#allocation49_spill]]  ;;  %s733_s18 = sshll.u32 %s2213_s2, 4  ;;  %s2271_s18 = int_to_ptr.vmem [resolvable:$true] %s733_s18 }
 0x1e8   : > { %s2471_s23 = sld [smem:[#allocation58_spill]]  ;;  %s1542_s27 = scalar_lea.vmem %s2271_s18, 256 }
 0x1e9   : > { %p1543_p4 = scmp.ne.s32.totalorder %s2271_s18, %s1542_s27  ;;  %s1712_s21 = smov [#allocation13]  }
 0x1ea   : > { %s1546_s2 = sshll.u32 %s1712_s21, 4  ;;  %s1547_s2 = int_to_ptr.vmem [resolvable:$false] %s1546_s2 }
 0x1eb   : > { %p1544_p9 = pnand %p1543_p4, %p1835_p10  ;;  %s1548_s5 = scalar_lea.vmem %s1547_s2, 512 }
 0x1ec   : > { %s2267_s1 = sadd.s32 %s2468_s16, %s1095_s28  ;;  %p1549_p6 = scmp.lt.s32.totalorder %s2271_s18, %s1547_s2 }
 0x1ed   : > { %s1096_s24 = sshll.u32 %s2267_s1, 7  ;;  %s714_s26 = scalar_lea.sflag [#allocation10], %s2469_s17 }
 0x1ee   : > { %s2472_s11 = smov %s2471_s23  ;;  %s2278_s0 = scalar_lea.hbm %s2471_s23, %s1096_s24 }
 0x1ef   : > { %p1545_p0 = pneg %p1544_p9  ;;  %p1550_p3 = scmp.lt.s32.totalorder %s1548_s5, %s1542_s27 }
 0x1f1   : > { %p1551_p13 = por %p1550_p3, %p1549_p6 }
 0x1f3   : > { %p1552_p7 = pnand %p1551_p13, %p1545_p0 }
 0x1f5   : > { %1555 = shalt.err (!%p1552_p7)
}
 0x1f6   : > { %s1556_s20 = scalar_lea.hbm %s2278_s0, 256  ;;  %s1560_s4 = scalar_lea.hbm %s2472_s11, 1024 }
 0x1f7   : > { %p1557_p1 = scmp.ne.s32.totalorder %s2278_s0, %s1556_s20  ;;  %p1561_p5 = scmp.lt.s32.totalorder %s2278_s0, %s2472_s11 }
 0x1f8   : > { %p1562_p8 = scmp.lt.s32.totalorder %s1560_s4, %s1556_s20 }
 0x1f9   : > { %p1558_p11 = pnand %p1557_p1, %p1835_p10 }
 0x1fa   : > { %p1563_p12 = por %p1562_p8, %p1561_p5 }
 0x1fb   : > { %p1559_p2 = pneg %p1558_p11 }
 0x1fd   : > { %p1564_p4 = pnand %p1563_p12, %p1559_p2 }
 0x1ff   : > { %1567 = shalt.err (!%p1564_p4)
}
 0x200   : > { %s1713_s7 = smov 128   ;;  %s1714_s13 = smov 8  }
 0x201   : > { %s2473_s19 = smov 256   ;;  %s2474_s25 = sld [smem:[#allocation59_spill]] }
 0x202   : > { %1129 = dma.vmem_to_hbm [thread:$0]  (%p1835_p10), %s2271_s18, 256, %s2278_s0, %s714_s26, %s1713_s7, %s2473_s19, %s1714_s13  }
 0x203   : > { %s750_s28 = sshll.u32 %s2208_s15, 4  ;;  %s719_s3 = scalar_lea.sflag [#allocation15], %s2469_s17  ;;  %s2314_s28 = int_to_ptr.vmem [resolvable:$true] %s750_s28 }
 0x204   : > { %s1568_s14 = scalar_lea.vmem %s2314_s28, 256  ;;  %s1715_s23 = smov [#allocation14]  }
 0x205   : > { %p1569_p9 = scmp.ne.s32.totalorder %s2314_s28, %s1568_s14  ;;  %s1572_s18 = sshll.u32 %s1715_s23, 4  ;;  %s1573_s18 = int_to_ptr.vmem [resolvable:$false] %s1572_s18 }
 0x206   : > { %s1574_s1 = scalar_lea.vmem %s1573_s18, 512  ;;  %p1575_p3 = scmp.lt.s32.totalorder %s2314_s28, %s1573_s18 }
 0x207   : > { %s2311_s16 = scalar_lea.hbm %s2474_s25, %s1096_s24  ;;  %p1570_p0 = pnand %p1569_p9, %p1835_p10 }
 0x208   : > { %p1576_p13 = scmp.lt.s32.totalorder %s1574_s1, %s1568_s14 }
 0x209   : > { %p1571_p6 = pneg %p1570_p0 }
 0x20a   : > { %p1577_p7 = por %p1576_p13, %p1575_p3 }
 0x20c   : > { %p1578_p1 = pnand %p1577_p7, %p1571_p6 }
 0x20e   : > { %1581 = shalt.err (!%p1578_p1)
}
 0x20f   : > { %s1582_s15 = scalar_lea.hbm %s2311_s16, 256  ;;  %s1586_s0 = scalar_lea.hbm %s2474_s25, 1024 }
 0x210   : > { %p1583_p11 = scmp.ne.s32.totalorder %s2311_s16, %s1582_s15  ;;  %p1587_p8 = scmp.lt.s32.totalorder %s2311_s16, %s2474_s25 }
 0x211   : > { %p1588_p12 = scmp.lt.s32.totalorder %s1586_s0, %s1582_s15 }
 0x212   : > { %p1584_p2 = pnand %p1583_p11, %p1835_p10 }
 0x213   : > { %p1589_p4 = por %p1588_p12, %p1587_p8 }
 0x214   : > { %p1585_p5 = pneg %p1584_p2 }
 0x216   : > { %p1590_p9 = pnand %p1589_p4, %p1585_p5 }
 0x218   : > { %1593 = shalt.err (!%p1590_p9)
}
 0x219   : > { %1130 = dma.vmem_to_hbm [thread:$0]  (%p1835_p10), %s2314_s28, 256, %s2311_s16, %s719_s3, %s1713_s7, %s2473_s19, %s1714_s13  }
 0x21a PF: > { %s2475_s21 = sld [smem:[#allocation43_spill]] }
 0x21b   : > { %s2476_s2 = sld [smem:[#allocation37_spill]] }
 0x21c   : > { %s2477_s5 = sld [smem:[#allocation47_spill]] }
 0x220   : > { %p1156_p0 = scmp.ge.s32.totalorder %s2475_s21, 2 }
 0x221   : > { %s765_s20 = sand.u32 1, %s2476_s2  }
 0x222   : > { %p2478_p6 = scmp.ne.s32.totalorder %s2477_s5, 0  ;;  %s766_s8 = scalar_lea.sflag [#allocation10], %s765_s20 }
 0x224   : > { %p1141_p3 = pnand %p1156_p0, %p2478_p6 }
 0x226   : > { %p1142_p13 = pneg %p1141_p3 }
 0x228   : > { %1653 = dma.done.wait (%p1142_p13), %s766_s8, 256  }
 0x229   : > { %1655 = vsyncadd (%p1142_p13), %s766_s8, 4294967040  ;;  %s775_s29 = scalar_lea.sflag [#allocation15], %s765_s20 }
 0x22a   : > { %1657 = dma.done.wait (%p1142_p13), %s775_s29, 256  }
 0x22b   : > { %1659 = vsyncadd (%p1142_p13), %s775_s29, 4294967040  ;;  %s45_s24 = sadd.s32 1, %s2475_s21   ;;  %s2479_s2 = sld [smem:[#allocation38_spill]] }
 0x22c   : > { %p42_p7 = scmp.ge.s32.totalorder %s45_s24, 6   ;;  %s2480_s18 = sld [smem:[#allocation39_spill]] }
 0x22d   : > { %s2481_s19 = sld [smem:[#allocation48_spill]] }
 0x22e   : > { %s2482_s20 = sld [smem:[#allocation41_spill]]  ;;  %44 = sbr.rel (!%p42_p7) target bundleno = 49 (0x31), region = 233 }
 0x22f   : > { %s2483_s21 = sld [smem:[#allocation42_spill]] }
 0x230   : > { %s2484_s22 = sld [smem:[#allocation44_spill]] }
 0x231   : > { %s2485_s23 = sld [smem:[#allocation45_spill]] }
 0x233   :  { %780 = vsyncpa [#allocation9], 1 }
 0x234   :  { %782 = vsyncpa [#allocation9 + $0x1], 1 }
 0x235   :  { %783 = vsyncpa [#allocation12], 1 }
 0x236   :  { %785 = vsyncpa [#allocation12 + $0x1], 1 }
 0x237   :  { %786 = vsyncpa [#allocation10], 1 }
 0x238   :  { %788 = vsyncpa [#allocation10 + $0x1], 1 }
 0x239   :  { %789 = vsyncpa [#allocation15], 1 }
 0x23a   :  { %791 = vsyncpa [#allocation15 + $0x1], 1 }
 0x23b   :  { %792 = vsyncmov [#allocation3] }
 0x23e   :  { %s793_s12 = vpop.sfrf %792 }
 0x23f   :  { %p1101_p10 = scmp.ne.s32.totalorder %s793_s12, 0 }
 0x241   :  { %797 = shalt.err (%p1101_p10)  }
 0x242   :  { %799 = vsyncmov [#allocation3 + $0x1] }
 0x245   :  { %s800_s4 = vpop.sfrf %799 }
 0x246   :  { %p1102_p1 = scmp.ne.s32.totalorder %s800_s4, 0 }
 0x248   :  { %804 = shalt.err (%p1102_p1)  }
 0x249   :  { %806 = vsyncmov [#allocation3 + $0x2] }
 0x24c   :  { %s807_s30 = vpop.sfrf %806 }
 0x24d   :  { %p1103_p11 = scmp.ne.s32.totalorder %s807_s30, 0 }
 0x24f   :  { %811 = shalt.err (%p1103_p11)  }
 0x250   :  { %813 = vsyncmov [#allocation3 + $0x3] }
 0x253   :  { %s814_s6 = vpop.sfrf %813 }
 0x254   :  { %p1104_p2 = scmp.ne.s32.totalorder %s814_s6, 0 }
 0x256   :  { %818 = shalt.err (%p1104_p2)  }
 0x257   :  { %820 = vsyncmov [#allocation3 + $0x4] }
 0x25a   :  { %s821_s11 = vpop.sfrf %820 }
 0x25b   :  { %p1105_p5 = scmp.ne.s32.totalorder %s821_s11, 0 }
 0x25d   :  { %825 = shalt.err (%p1105_p5)  }
 0x25e   :  { %827 = vsyncmov [#allocation3 + $0x5] }
 0x261   :  { %s828_s22 = vpop.sfrf %827 }
 0x262   :  { %p1106_p8 = scmp.ne.s32.totalorder %s828_s22, 0 }
 0x264   :  { %832 = shalt.err (%p1106_p8)  }
 0x265   :  { %834 = vsyncmov [#allocation3 + $0x6] }
 0x268   :  { %s835_s7 = vpop.sfrf %834 }
 0x269   :  { %p1107_p12 = scmp.ne.s32.totalorder %s835_s7, 0 }
 0x26b   :  { %839 = shalt.err (%p1107_p12)  }
 0x26c   :  { %841 = vsyncmov [#allocation3 + $0x7] }
 0x26f   :  { %s842_s13 = vpop.sfrf %841 }
 0x270   :  { %p1108_p4 = scmp.ne.s32.totalorder %s842_s13, 0 }
 0x272   :  { %846 = shalt.err (%p1108_p4)  }

</bundles_post_ra>
